<compile_context>
chip_gen: v5e
topology: v5e:2x2
jax: 0.10.0
libtpu: 0.0.40
codegen_flags: <defaults>
</compile_context>

<pallas_src>
import jax
import jax.numpy as jnp
from jax.experimental import pallas as pl
from jax.experimental.pallas import tpu as pltpu

# Module hyper-parameters (img_shape is data dependent in the original
# script; we pick a small, representative value).
IMG_SHAPE = 64
NN_DIM = 50
NN_DIM2 = 25
LATENT_DIM = 10
NEG_SLOPE = 0.01  # F.leaky_relu default negative_slope

LANES = 128                      # lane width of every slab / padded layer
EPS_OFF = 0                      # eps occupies input-slab lanes [0, 10)
X_OFF = LATENT_DIM               # x   occupies input-slab lanes [10, 74)

N_LAYERS = 7
(L_FC1, L_FC2, L_MU, L_LV, L_FC3, L_FC4, L_FC5) = range(N_LAYERS)

# Output slab: [recon (64) | mu (10) | logvar (10) | zero pad] -> 128 lanes.
OUT_PAD = LANES - IMG_SHAPE - 2 * LATENT_DIM


def vae_kernel(in_ref, w_ref, b_ref, out_ref):
    """in_ref: [tb,128] f32 (eps|x|pad). w_ref: [7,128,128] bf16. b_ref: [7,1,128] f32."""

    def layer(act_f32, l, relu=True):
        # bf16 operands into the MXU, f32 accumulation; elementwise stays f32.
        y = jnp.dot(act_f32.astype(jnp.bfloat16), w_ref[l],
                    preferred_element_type=jnp.float32) + b_ref[l]
        return jnp.where(y > 0, y, NEG_SLOPE * y) if relu else y

    a = in_ref[...]                          # [tb,128]: eps | x | 0

    # ---- encode ----  (fc1 rows for eps/pad lanes are zero -> x-only matmul)
    h1 = layer(a, L_FC1)
    h2 = layer(h1, L_FC2)
    mu_p = layer(h2, L_MU, relu=False)       # mu     in lanes 0-9, rest 0
    lv_p = layer(h2, L_LV, relu=False)       # logvar in lanes 0-9, rest 0

    # ---- reparameterize: z = eps * exp(0.5*logvar) + mu ----
    # Lanes 0-9 are exact; lanes 10-73 carry x*exp(0)+0 = x (finite garbage)
    # and are annihilated by the zero rows 10-127 of the fc3 weight slab.
    z = a * jnp.exp(0.5 * lv_p) + mu_p

    # ---- decode ----
    h3 = layer(z, L_FC3)
    h4 = layer(h3, L_FC4)
    rec_p = layer(h4, L_FC5, relu=False)     # recon in lanes 0-63, rest 0

    # Single lane-dense (128-wide) unmasked store: recon | mu | logvar | pad.
    pad = jnp.zeros((rec_p.shape[0], OUT_PAD), jnp.float32)
    out_ref[...] = jnp.concatenate(
        [rec_p[:, :IMG_SHAPE], mu_p[:, :LATENT_DIM], lv_p[:, :LATENT_DIM], pad],
        axis=-1)


def init_linear(key, fan_in, fan_out):
    """Deterministic init mimicking torch.nn.Linear (uniform +-1/sqrt(fan_in)).

    Weight stored as [in, out] so the kernel does x @ W + b.
    """
    kw, kb = jax.random.split(key)
    bound = 1.0 / jnp.sqrt(fan_in)
    w = jax.random.uniform(kw, (fan_in, fan_out), jnp.float32, -bound, bound)
    b = jax.random.uniform(kb, (1, fan_out), jnp.float32, -bound, bound)
    return w, b


def place_weight(w, row_off=0):
    """Zero-pad an [in,out] weight into a [128,128] slot at (row_off, 0)."""
    slab = jnp.zeros((LANES, LANES), jnp.float32)
    return slab.at[row_off:row_off + w.shape[0], :w.shape[1]].set(w)


def place_bias(b):
    slab = jnp.zeros((1, LANES), jnp.float32)
    return slab.at[:, :b.shape[1]].set(b)


def pack_params(w1, b1, w2, b2, w21, b21, w22, b22, w3, b3, w4, b4, w5, b5):
    """-> (w_slab [7,128,128] bf16, b_slab [7,1,128] f32)."""
    w_slab = jnp.stack([
        place_weight(w1, row_off=X_OFF),   # fc1 consumes the x lanes of the input slab
        place_weight(w2),
        place_weight(w21),
        place_weight(w22),
        place_weight(w3),
        place_weight(w4),
        place_weight(w5),
    ]).astype(jnp.bfloat16)
    b_slab = jnp.stack([place_bias(b) for b in (b1, b2, b21, b22, b3, b4, b5)])
    return w_slab, b_slab


def vae_forward(x, eps, w_slab, b_slab, *, n_tiles=2):
    """x: [B, IMG_SHAPE] f32, eps: [B, LATENT_DIM] f32 -> (recon, mu, logvar)."""
    B = x.shape[0]
    # Tile = ceil(B / n_tiles) rounded up to a sublane multiple of 8.
    rows_per_tile = (B + n_tiles - 1) // n_tiles
    tb = max(8, ((rows_per_tile + 7) // 8) * 8)
    Bp = tb * n_tiles

    # Lane-dense input slab: eps | x | zero pad (extra rows are zero too).
    in_slab = jnp.zeros((Bp, LANES), jnp.float32)
    in_slab = in_slab.at[:B, EPS_OFF:EPS_OFF + LATENT_DIM].set(eps)
    in_slab = in_slab.at[:B, X_OFF:X_OFF + IMG_SHAPE].set(x)

    cost = pl.CostEstimate(
        flops=2 * Bp * N_LAYERS * LANES * LANES,
        transcendentals=Bp * LANES,
        bytes_accessed=2 * Bp * LANES * 4 + w_slab.size * 2 + b_slab.size * 4,
    )

    slab = pl.pallas_call(
        vae_kernel,
        out_shape=jax.ShapeDtypeStruct((Bp, LANES), jnp.float32),
        grid=(n_tiles,),
        in_specs=[
            pl.BlockSpec((tb, LANES), lambda i: (i, 0)),
            # Weight / bias slabs stay resident in VMEM (constant index_map).
            pl.BlockSpec((N_LAYERS, LANES, LANES), lambda i: (0, 0, 0)),
            pl.BlockSpec((N_LAYERS, 1, LANES), lambda i: (0, 0, 0)),
        ],
        out_specs=pl.BlockSpec((tb, LANES), lambda i: (i, 0)),
        compiler_params=pltpu.CompilerParams(
            dimension_semantics=("parallel",),
            vmem_limit_bytes=32 * 1024 * 1024,   # explicit budget; portable v5e/v6e/v7x
        ),
        cost_estimate=cost,
    )(in_slab, w_slab, b_slab)

    recon = slab[:B, :IMG_SHAPE]
    mu = slab[:B, IMG_SHAPE:IMG_SHAPE + LATENT_DIM]
    logvar = slab[:B, IMG_SHAPE + LATENT_DIM:IMG_SHAPE + 2 * LATENT_DIM]
    return recon, mu, logvar


if __name__ == "__main__":
    key = jax.random.PRNGKey(0)
    keys = jax.random.split(key, 10)

    # Parameters (deterministic, in-script; no checkpoint loading).
    w1, b1 = init_linear(keys[0], IMG_SHAPE, NN_DIM)
    w2, b2 = init_linear(keys[1], NN_DIM, NN_DIM2)
    w21, b21 = init_linear(keys[2], NN_DIM2, LATENT_DIM)
    w22, b22 = init_linear(keys[3], NN_DIM2, LATENT_DIM)
    w3, b3 = init_linear(keys[4], LATENT_DIM, NN_DIM2)
    w4, b4 = init_linear(keys[5], NN_DIM2, NN_DIM)
    w5, b5 = init_linear(keys[6], NN_DIM, IMG_SHAPE)

    w_slab, b_slab = pack_params(w1, b1, w2, b2, w21, b21, w22, b22,
                                 w3, b3, w4, b4, w5, b5)

    # Batch intentionally not a multiple of the tile (exercises the 8-row pad).
    B = 200
    x = jax.random.normal(keys[7], (B, IMG_SHAPE), jnp.float32)
    # eps ~ N(0,1), like torch.randn_like(std) — sampled outside, consumed by
    # the fused reparameterization inside the kernel.
    # TODO(synk): could use pltpu.prng_seed/prng_random_bits to sample eps in-kernel.
    eps = jax.random.normal(keys[8], (B, LATENT_DIM), jnp.float32)

    recon, mu, logvar = vae_forward(x, eps, w_slab, b_slab, n_tiles=2)
    jax.block_until_ready((recon, mu, logvar))

    # Pure-JAX reference with the same bf16-into-MXU casting pattern.
    def ref_forward(x, eps):
        lrelu = lambda v: jnp.where(v > 0, v, NEG_SLOPE * v)
        mm = lambda a, w: jnp.dot(a.astype(jnp.bfloat16), w.astype(jnp.bfloat16),
                                  preferred_element_type=jnp.float32)
        h1 = lrelu(mm(x, w1) + b1)
        h2 = lrelu(mm(h1, w2) + b2)
        mu_r = mm(h2, w21) + b21
        lv_r = mm(h2, w22) + b22
        z = eps * jnp.exp(0.5 * lv_r) + mu_r
        h3 = lrelu(mm(z, w3) + b3)
        h4 = lrelu(mm(h3, w4) + b4)
        return mm(h4, w5) + b5, mu_r, lv_r

    r_ref, mu_ref_v, lv_ref_v = ref_forward(x, eps)
    # bf16 matmul inputs -> looser tolerances than the f32 original.
    assert jnp.allclose(recon, r_ref, atol=2e-2, rtol=2e-2)
    assert jnp.allclose(mu, mu_ref_v, atol=2e-2, rtol=2e-2)
    assert jnp.allclose(logvar, lv_ref_v, atol=2e-2, rtol=2e-2)

    print("KERNEL_OK")
</pallas_src>

<mosaic_0001>
module attributes {stable_mosaic.version = 11 : i64} {
  func.func @vae_kernel(%arg0: i32, %arg1: memref<104x128xf32, #tpu.memory_space<vmem>>, %arg2: memref<7x128x128xbf16, #tpu.memory_space<vmem>>, %arg3: memref<7x1x128xf32, #tpu.memory_space<vmem>>, %arg4: memref<104x128xf32, #tpu.memory_space<vmem>>) attributes {dimension_semantics = [#tpu.dimension_semantics<parallel>], iteration_bounds = array<i64: 2>, scalar_prefetch = 0 : i64, scratch_operands = 0 : i64, tpu.core_type = #tpu.core_type<tc>, window_params = [{transform_indices = @transform_0, window_bounds = array<i64: 104, 128>}, {pipeline_mode = #tpu.pipeline_mode<synchronous>, transform_indices = @transform_1, window_bounds = array<i64: 7, 128, 128>}, {pipeline_mode = #tpu.pipeline_mode<synchronous>, transform_indices = @transform_2, window_bounds = array<i64: 7, 1, 128>}, {transform_indices = @transform_3, window_bounds = array<i64: 104, 128>}]} {
    %c0 = arith.constant 0 : index
    %c0_0 = arith.constant 0 : index
    %0 = vector.load %arg1[%c0, %c0_0] : memref<104x128xf32, #tpu.memory_space<vmem>>, vector<104x128xf32>
    %1 = arith.truncf %0 : vector<104x128xf32> to vector<104x128xbf16>
    %c0_1 = arith.constant 0 : index
    %c0_2 = arith.constant 0 : index
    %c0_3 = arith.constant 0 : index
    %2 = vector.load %arg2[%c0_1, %c0_2, %c0_3] : memref<7x128x128xbf16, #tpu.memory_space<vmem>>, vector<1x128x128xbf16>
    %3 = vector.shape_cast %2 : vector<1x128x128xbf16> to vector<128x128xbf16>
    %cst = arith.constant dense<0.000000e+00> : vector<104x128xf32>
    %4 = tpu.matmul %1, %3, %cst {dimension_numbers = #tpu.dot_dimension_numbers<[1], [0], [0], [1], [0, 0, 1, 1], [], []>} : vector<104x128xbf16>, vector<128x128xbf16>, vector<104x128xf32> -> vector<104x128xf32>
    %c0_4 = arith.constant 0 : index
    %c0_5 = arith.constant 0 : index
    %c0_6 = arith.constant 0 : index
    %5 = vector.load %arg3[%c0_4, %c0_5, %c0_6] : memref<7x1x128xf32, #tpu.memory_space<vmem>>, vector<1x1x128xf32>
    %6 = vector.shape_cast %5 : vector<1x1x128xf32> to vector<1x128xf32>
    %7 = vector.broadcast %6 : vector<1x128xf32> to vector<104x128xf32>
    %8 = arith.addf %4, %7 : vector<104x128xf32>
    %cst_7 = arith.constant 0.000000e+00 : f32
    %9 = vector.broadcast %cst_7 : f32 to vector<104x128xf32>
    %10 = arith.cmpf ogt, %8, %9 : vector<104x128xf32>
    %cst_8 = arith.constant 0.00999999977 : f32
    %11 = vector.broadcast %cst_8 : f32 to vector<104x128xf32>
    %12 = arith.mulf %11, %8 : vector<104x128xf32>
    %13 = arith.select %10, %8, %12 : vector<104x128xi1>, vector<104x128xf32>
    %14 = arith.truncf %13 : vector<104x128xf32> to vector<104x128xbf16>
    %c1 = arith.constant 1 : index
    %c0_9 = arith.constant 0 : index
    %c0_10 = arith.constant 0 : index
    %15 = vector.load %arg2[%c1, %c0_9, %c0_10] : memref<7x128x128xbf16, #tpu.memory_space<vmem>>, vector<1x128x128xbf16>
    %16 = vector.shape_cast %15 : vector<1x128x128xbf16> to vector<128x128xbf16>
    %cst_11 = arith.constant dense<0.000000e+00> : vector<104x128xf32>
    %17 = tpu.matmul %14, %16, %cst_11 {dimension_numbers = #tpu.dot_dimension_numbers<[1], [0], [0], [1], [0, 0, 1, 1], [], []>} : vector<104x128xbf16>, vector<128x128xbf16>, vector<104x128xf32> -> vector<104x128xf32>
    %c1_12 = arith.constant 1 : index
    %c0_13 = arith.constant 0 : index
    %c0_14 = arith.constant 0 : index
    %18 = vector.load %arg3[%c1_12, %c0_13, %c0_14] : memref<7x1x128xf32, #tpu.memory_space<vmem>>, vector<1x1x128xf32>
    %19 = vector.shape_cast %18 : vector<1x1x128xf32> to vector<1x128xf32>
    %20 = vector.broadcast %19 : vector<1x128xf32> to vector<104x128xf32>
    %21 = arith.addf %17, %20 : vector<104x128xf32>
    %cst_15 = arith.constant 0.000000e+00 : f32
    %22 = vector.broadcast %cst_15 : f32 to vector<104x128xf32>
    %23 = arith.cmpf ogt, %21, %22 : vector<104x128xf32>
    %cst_16 = arith.constant 0.00999999977 : f32
    %24 = vector.broadcast %cst_16 : f32 to vector<104x128xf32>
    %25 = arith.mulf %24, %21 : vector<104x128xf32>
    %26 = arith.select %23, %21, %25 : vector<104x128xi1>, vector<104x128xf32>
    %27 = arith.truncf %26 : vector<104x128xf32> to vector<104x128xbf16>
    %c2 = arith.constant 2 : index
    %c0_17 = arith.constant 0 : index
    %c0_18 = arith.constant 0 : index
    %28 = vector.load %arg2[%c2, %c0_17, %c0_18] : memref<7x128x128xbf16, #tpu.memory_space<vmem>>, vector<1x128x128xbf16>
    %29 = vector.shape_cast %28 : vector<1x128x128xbf16> to vector<128x128xbf16>
    %cst_19 = arith.constant dense<0.000000e+00> : vector<104x128xf32>
    %30 = tpu.matmul %27, %29, %cst_19 {dimension_numbers = #tpu.dot_dimension_numbers<[1], [0], [0], [1], [0, 0, 1, 1], [], []>} : vector<104x128xbf16>, vector<128x128xbf16>, vector<104x128xf32> -> vector<104x128xf32>
    %c2_20 = arith.constant 2 : index
    %c0_21 = arith.constant 0 : index
    %c0_22 = arith.constant 0 : index
    %31 = vector.load %arg3[%c2_20, %c0_21, %c0_22] : memref<7x1x128xf32, #tpu.memory_space<vmem>>, vector<1x1x128xf32>
    %32 = vector.shape_cast %31 : vector<1x1x128xf32> to vector<1x128xf32>
    %33 = vector.broadcast %32 : vector<1x128xf32> to vector<104x128xf32>
    %34 = arith.addf %30, %33 : vector<104x128xf32>
    %35 = arith.truncf %26 : vector<104x128xf32> to vector<104x128xbf16>
    %c3 = arith.constant 3 : index
    %c0_23 = arith.constant 0 : index
    %c0_24 = arith.constant 0 : index
    %36 = vector.load %arg2[%c3, %c0_23, %c0_24] : memref<7x128x128xbf16, #tpu.memory_space<vmem>>, vector<1x128x128xbf16>
    %37 = vector.shape_cast %36 : vector<1x128x128xbf16> to vector<128x128xbf16>
    %cst_25 = arith.constant dense<0.000000e+00> : vector<104x128xf32>
    %38 = tpu.matmul %35, %37, %cst_25 {dimension_numbers = #tpu.dot_dimension_numbers<[1], [0], [0], [1], [0, 0, 1, 1], [], []>} : vector<104x128xbf16>, vector<128x128xbf16>, vector<104x128xf32> -> vector<104x128xf32>
    %c3_26 = arith.constant 3 : index
    %c0_27 = arith.constant 0 : index
    %c0_28 = arith.constant 0 : index
    %39 = vector.load %arg3[%c3_26, %c0_27, %c0_28] : memref<7x1x128xf32, #tpu.memory_space<vmem>>, vector<1x1x128xf32>
    %40 = vector.shape_cast %39 : vector<1x1x128xf32> to vector<1x128xf32>
    %41 = vector.broadcast %40 : vector<1x128xf32> to vector<104x128xf32>
    %42 = arith.addf %38, %41 : vector<104x128xf32>
    %cst_29 = arith.constant 5.000000e-01 : f32
    %43 = vector.broadcast %cst_29 : f32 to vector<104x128xf32>
    %44 = arith.mulf %43, %42 : vector<104x128xf32>
    %45 = math.exp %44 : vector<104x128xf32>
    %46 = arith.mulf %0, %45 : vector<104x128xf32>
    %47 = arith.addf %46, %34 : vector<104x128xf32>
    %48 = arith.truncf %47 : vector<104x128xf32> to vector<104x128xbf16>
    %c4 = arith.constant 4 : index
    %c0_30 = arith.constant 0 : index
    %c0_31 = arith.constant 0 : index
    %49 = vector.load %arg2[%c4, %c0_30, %c0_31] : memref<7x128x128xbf16, #tpu.memory_space<vmem>>, vector<1x128x128xbf16>
    %50 = vector.shape_cast %49 : vector<1x128x128xbf16> to vector<128x128xbf16>
    %cst_32 = arith.constant dense<0.000000e+00> : vector<104x128xf32>
    %51 = tpu.matmul %48, %50, %cst_32 {dimension_numbers = #tpu.dot_dimension_numbers<[1], [0], [0], [1], [0, 0, 1, 1], [], []>} : vector<104x128xbf16>, vector<128x128xbf16>, vector<104x128xf32> -> vector<104x128xf32>
    %c4_33 = arith.constant 4 : index
    %c0_34 = arith.constant 0 : index
    %c0_35 = arith.constant 0 : index
    %52 = vector.load %arg3[%c4_33, %c0_34, %c0_35] : memref<7x1x128xf32, #tpu.memory_space<vmem>>, vector<1x1x128xf32>
    %53 = vector.shape_cast %52 : vector<1x1x128xf32> to vector<1x128xf32>
    %54 = vector.broadcast %53 : vector<1x128xf32> to vector<104x128xf32>
    %55 = arith.addf %51, %54 : vector<104x128xf32>
    %cst_36 = arith.constant 0.000000e+00 : f32
    %56 = vector.broadcast %cst_36 : f32 to vector<104x128xf32>
    %57 = arith.cmpf ogt, %55, %56 : vector<104x128xf32>
    %cst_37 = arith.constant 0.00999999977 : f32
    %58 = vector.broadcast %cst_37 : f32 to vector<104x128xf32>
    %59 = arith.mulf %58, %55 : vector<104x128xf32>
    %60 = arith.select %57, %55, %59 : vector<104x128xi1>, vector<104x128xf32>
    %61 = arith.truncf %60 : vector<104x128xf32> to vector<104x128xbf16>
    %c5 = arith.constant 5 : index
    %c0_38 = arith.constant 0 : index
    %c0_39 = arith.constant 0 : index
    %62 = vector.load %arg2[%c5, %c0_38, %c0_39] : memref<7x128x128xbf16, #tpu.memory_space<vmem>>, vector<1x128x128xbf16>
    %63 = vector.shape_cast %62 : vector<1x128x128xbf16> to vector<128x128xbf16>
    %cst_40 = arith.constant dense<0.000000e+00> : vector<104x128xf32>
    %64 = tpu.matmul %61, %63, %cst_40 {dimension_numbers = #tpu.dot_dimension_numbers<[1], [0], [0], [1], [0, 0, 1, 1], [], []>} : vector<104x128xbf16>, vector<128x128xbf16>, vector<104x128xf32> -> vector<104x128xf32>
    %c5_41 = arith.constant 5 : index
    %c0_42 = arith.constant 0 : index
    %c0_43 = arith.constant 0 : index
    %65 = vector.load %arg3[%c5_41, %c0_42, %c0_43] : memref<7x1x128xf32, #tpu.memory_space<vmem>>, vector<1x1x128xf32>
    %66 = vector.shape_cast %65 : vector<1x1x128xf32> to vector<1x128xf32>
    %67 = vector.broadcast %66 : vector<1x128xf32> to vector<104x128xf32>
    %68 = arith.addf %64, %67 : vector<104x128xf32>
    %cst_44 = arith.constant 0.000000e+00 : f32
    %69 = vector.broadcast %cst_44 : f32 to vector<104x128xf32>
    %70 = arith.cmpf ogt, %68, %69 : vector<104x128xf32>
    %cst_45 = arith.constant 0.00999999977 : f32
    %71 = vector.broadcast %cst_45 : f32 to vector<104x128xf32>
    %72 = arith.mulf %71, %68 : vector<104x128xf32>
    %73 = arith.select %70, %68, %72 : vector<104x128xi1>, vector<104x128xf32>
    %74 = arith.truncf %73 : vector<104x128xf32> to vector<104x128xbf16>
    %c6 = arith.constant 6 : index
    %c0_46 = arith.constant 0 : index
    %c0_47 = arith.constant 0 : index
    %75 = vector.load %arg2[%c6, %c0_46, %c0_47] : memref<7x128x128xbf16, #tpu.memory_space<vmem>>, vector<1x128x128xbf16>
    %76 = vector.shape_cast %75 : vector<1x128x128xbf16> to vector<128x128xbf16>
    %cst_48 = arith.constant dense<0.000000e+00> : vector<104x128xf32>
    %77 = tpu.matmul %74, %76, %cst_48 {dimension_numbers = #tpu.dot_dimension_numbers<[1], [0], [0], [1], [0, 0, 1, 1], [], []>} : vector<104x128xbf16>, vector<128x128xbf16>, vector<104x128xf32> -> vector<104x128xf32>
    %c6_49 = arith.constant 6 : index
    %c0_50 = arith.constant 0 : index
    %c0_51 = arith.constant 0 : index
    %78 = vector.load %arg3[%c6_49, %c0_50, %c0_51] : memref<7x1x128xf32, #tpu.memory_space<vmem>>, vector<1x1x128xf32>
    %79 = vector.shape_cast %78 : vector<1x1x128xf32> to vector<1x128xf32>
    %80 = vector.broadcast %79 : vector<1x128xf32> to vector<104x128xf32>
    %81 = arith.addf %77, %80 : vector<104x128xf32>
    %cst_52 = arith.constant 0.000000e+00 : f32
    %82 = vector.broadcast %cst_52 : f32 to vector<104x44xf32>
    %83 = vector.extract_strided_slice %81 {offsets = [0, 0], sizes = [104, 64], strides = [1, 1]} : vector<104x128xf32> to vector<104x64xf32>
    %84 = vector.extract_strided_slice %34 {offsets = [0, 0], sizes = [104, 10], strides = [1, 1]} : vector<104x128xf32> to vector<104x10xf32>
    %85 = vector.extract_strided_slice %42 {offsets = [0, 0], sizes = [104, 10], strides = [1, 1]} : vector<104x128xf32> to vector<104x10xf32>
    %86 = tpu.concatenate %83, %84, %85, %82 in 1 : vector<104x64xf32>, vector<104x10xf32>, vector<104x10xf32>, vector<104x44xf32> -> vector<104x128xf32>
    %c0_53 = arith.constant 0 : index
    %c0_54 = arith.constant 0 : index
    %87 = vector.load %arg4[%c0_53, %c0_54] : memref<104x128xf32, #tpu.memory_space<vmem>>, vector<104x128xf32>
    tpu.vector_store %arg4[%c0_53, %c0_54], %86 {strides = array<i32>} : memref<104x128xf32, #tpu.memory_space<vmem>>, vector<104x128xf32>,
    return
  }
  func.func @transform_0(%arg0: i32) -> (i32, i32) {
    %c0_i32 = arith.constant 0 : i32
    %c0_i32_0 = arith.constant 0 : i32
    return %arg0, %c0_i32 : i32, i32
  }
  func.func @transform_1(%arg0: i32) -> (i32, i32, i32) {
    %c0_i32 = arith.constant 0 : i32
    %c0_i32_0 = arith.constant 0 : i32
    %c0_i32_1 = arith.constant 0 : i32
    %c0_i32_2 = arith.constant 0 : i32
    return %c0_i32, %c0_i32_0, %c0_i32_1 : i32, i32, i32
  }
  func.func @transform_2(%arg0: i32) -> (i32, i32, i32) {
    %c0_i32 = arith.constant 0 : i32
    %c0_i32_0 = arith.constant 0 : i32
    %c0_i32_1 = arith.constant 0 : i32
    %c0_i32_2 = arith.constant 0 : i32
    return %c0_i32, %c0_i32_0, %c0_i32_1 : i32, i32, i32
  }
  func.func @transform_3(%arg0: i32) -> (i32, i32) {
    %c0_i32 = arith.constant 0 : i32
    %c0_i32_0 = arith.constant 0 : i32
    return %arg0, %c0_i32 : i32, i32
  }
}

</mosaic_0001>

<bundles_post_ra>
// kernel: tpu_custom_call.1
= control target key start
LH: loop header
LB: loop body
LE: loop exit
PB: predicated region body
PF: predicated region fallthrough
CT: control target
= control target key end

     0   :  { %8 = vsyncpa [#allocation3], 0  ;;  %s2581_s0 = inlined_call_operand.hbm [shape: f32[208,128], index: 0, kind: input, shape index: {}]   ;;  %s2582_s1 = inlined_call_operand.hbm [shape: bf16[7,128,128], index: 1, kind: input, shape index: {}]   ;;  %s2583_s2 = inlined_call_operand.hbm [shape: f32[7,1,128], index: 2, kind: input, shape index: {}]   ;;  %s2584_s3 = inlined_call_operand.hbm [shape: f32[208,128], index: 3, kind: output, shape index: {}]  }
   0x1   :  { %10 = vsyncpa [#allocation3 + $0x1], 0 }
   0x2   :  { %11 = vsyncpa [#allocation6], 0 }
   0x3   :  { %12 = vsyncpa [#allocation4], 0 }
   0x4   :  { %14 = vsyncpa [#allocation4 + $0x1], 0  ;;  %s2182_s12 = smov 0   ;;  %s2184_s13 = smov 0  }
   0x5   :  { %s2186_s14 = smov 0   ;;  %s2188_s15 = smov 0  }
   0x6 LB: > { %s2203_s16 = sadd.s32 4294967295, %s2148_s15   ;;  %s1558_s17 = sadd.s32 4294967294, %s2148_s15   ;;  %s2148_s15 = sphi %s2188_s15, %s2594_s15   ;;  %s2144_s14 = sphi %s2186_s14, %s2593_s14   ;;  %s2140_s13 = sphi %s2184_s13, %s2592_s13   ;;  %s2136_s12 = sphi %s2182_s12, %s2591_s12  }
   0x7   : > { %p40_p0 = scmp.ne.s32.totalorder %s2140_s13, %s2136_s12  ;;  %p41_p1 = scmp.eq.s32.totalorder %s2203_s16, 0 }
   0x8   : > { %p106_p2 = scmp.eq.s32.totalorder %s2203_s16, 1  ;;  %p112_p3 = scmp.eq.s32.totalorder %s1558_s17, 1 }
   0x9   : > { %p2212_p4 = por %p41_p1, %p40_p0  ;;  %p1559_p5 = scmp.ge.s32.totalorder %s2148_s15, 1 }
   0xa   : > { %p2217_p6 = por %p112_p3, %p40_p0  ;;  %p119_p7 = scmp.lt.s32.totalorder %s2148_s15, 3 }
   0xb   : > { %s130_s22 = sshll.u32 %s2582_s1, 4  ;;  %s2150_s24 = smov [#allocation5]   ;;  %s131_s22 = int_to_ptr.hbm [resolvable:$true] %s130_s22 }
   0xc   : > { %p2225_p8 = pnand %p1559_p5, %p119_p7  ;;  %s132_s25 = sshll.u32 %s2150_s24, 4  ;;  %s133_s25 = int_to_ptr.vmem [resolvable:$true] %s132_s25 }
   0xd   : > { %s144_s28 = sshll.u32 %s2583_s2, 4  ;;  %s2151_s29 = smov 64   ;;  %s145_s28 = int_to_ptr.hbm [resolvable:$true] %s144_s28 }
   0xe   : > { %p1890_p9 = pneg %p2225_p8  ;;  %s2152_s30 = smov 4  }
   0xf   : > { %s2153_s4 = smov [#allocation7]   ;;  %s2154_s6 = smov 16  }
  0x10   : > { %p1891_p10 = pnand %p1890_p9, %p41_p1  ;;  %s146_s5 = sshll.u32 %s2153_s4, 4  ;;  %s147_s5 = int_to_ptr.vmem [resolvable:$true] %s146_s5 }
  0x11   : > { %s2155_s7 = smov 1   ;;  %s2238_s8 = sadd.s32 1, %s2148_s15  }
  0x12   : > { %1893 = dma.hbm_to_vmem [thread:$0]  (!%p1891_p10), %s131_s22, 7168, %s133_s25, [#allocation6], %s2151_s29, %s2151_s29, %s2152_s30  }
  0x13   : > { %1896 = dma.hbm_to_vmem [thread:$0]  (!%p1891_p10), %s145_s28, 112, %s147_s5, [#allocation6], %s2154_s6, %s2154_s6, %s2155_s7  }
  0x14   : > { %s24_s9 = ssub.s32 %s2148_s15, %s2238_s8  ;;  %s27_s10 = sadd.s32 1, %s2144_s14 }
  0x15   : > { %p25_p12 = scmp.eq.s32.totalorder %s24_s9, 0  ;;  %p34_p13 = scmp.ne.s32.totalorder %s2144_s14, %s2140_s13 }
  0x16   : > { %p35_p0 = scmp.eq.s32.totalorder %s2148_s15, 0  ;;  %p1907_p7 = scmp.lt.s32.totalorder %s2148_s15, 2 }
  0x17   : > { %s2247_s11 = scalar_select %p25_p12, %s2144_s14, %s27_s10  }
  0x18   : > { %p36_p3 = por %p35_p0, %p34_p13  ;;  %p2251_p5 = por %p106_p2, %p34_p13 }
  0x19   : > { %s160_s20 = sand.u32 1, %s2144_s14   ;;  %s1794_s22 = smul.u32 104, %s2148_s15 }
  0x1a   : > { %s1876_s21 = smul.u32 104, %s160_s20  ;;  %p2258_p9 = pnand %p1907_p7, %p36_p3 }
  0x1b   : > { %s169_s27 = scalar_lea.hbm %s2581_s0, %s1794_s22  ;;  %s161_s4 = scalar_lea.sflag [#allocation3], %s160_s20 }
  0x1c   : > { %s164_s28 = scalar_lea.vmem [#allocation2], %s1876_s21  ;;  %s170_s30 = sshll.u32 %s169_s27, 4  ;;  %s171_s30 = int_to_ptr.hbm [resolvable:$true] %s170_s30 }
  0x1d   : > { %s172_s29 = sshll.u32 %s164_s28, 4  ;;  %s2048_s5 = sshra.s32 %s171_s30, 4  ;;  %s173_s29 = int_to_ptr.vmem [resolvable:$true] %s172_s29  ;;  %s2049_s5 = int_to_ptr.hbm [resolvable:$true] %s2048_s5 }
  0x1e   : > { %s2050_s6 = scalar_lea.hbm %s2049_s5, 104  ;;  %p2052_p10 = pneg %p2258_p9 }
  0x1f   : > { %p2051_p2 = scmp.ne.s32.totalorder %s2049_s5, %s2050_s6  ;;  %s2055_s10 = scalar_lea.hbm %s2581_s0, 208 }
  0x20   : > { %p2056_p0 = scmp.lt.s32.totalorder %s2049_s5, %s2581_s0  ;;  %p2057_p3 = scmp.lt.s32.totalorder %s2055_s10, %s2050_s6 }
  0x21   : > { %p2053_p12 = pnand %p2052_p10, %p2051_p2 }
  0x22   : > { %p2058_p7 = por %p2057_p3, %p2056_p0 }
  0x23   : > { %p2054_p13 = pneg %p2053_p12 }
  0x25   : > { %p2059_p11 = pnand %p2058_p7, %p2054_p13 }
  0x27   : > { %2062 = shalt.err (!%p2059_p11)
}
  0x28   : > { %s2156_s20 = smov 128   ;;  %s2157_s21 = smov 8  }
  0x29   : > { %1900 = dma.hbm_to_vmem [thread:$0]  (!%p2258_p9), %s171_s30, 1664, %s173_s29, %s161_s4, %s2156_s20, %s2156_s20, %s2157_s21  }
  0x2a   : > { %184 = sbr.rel (%p2225_p8) target bundleno = 1042 (0x412), region = 32  ;;  %s2278_s26 = sand.u32 (!%p2225_p8), 1, %s2140_s13  }
  0x2b   : > { %s1877_s27 = smul.u32 (!%p2225_p8), 104, %s2278_s26  ;;  %s187_s28 = scalar_lea.sflag (!%p2225_p8), [#allocation3], %s2278_s26 }
  0x2d   : > { %s2284_s5 = scalar_lea.vmem (!%p2225_p8), [#allocation2], %s1877_s27 }
  0x2f   : > { %2123 = dma.done.wait (%p2212_p4), %s187_s28, 1664  }
  0x30   : > { %2125 = vsyncadd (%p2212_p4), %s187_s28, 4294965632 }
  0x31   : > { %2127 = dma.done.wait (%p41_p1), [#allocation6], 7280  }
  0x32   : > { %2129 = vsyncadd (%p41_p1), [#allocation6], 4294960016  ;;  %v1802_v0 = vld [vmem:[#allocation5 + $0x38] sm:$0xff]  ;;  %v1801_v1 = vld [vmem:[#allocation5 + $0x30] sm:$0xff]  ;;  %s2158_s18 = smov 74   ;;  %s2159_s23 = smov 64  }
  0x33   : > { %314 = vmatpush.bf16.msra.mxu0 %v1802_v0  ;;  %1852 = vmatpush.bf16.msra.mxu3 %v1802_v0  ;;  %v1800_v2 = vld [vmem:[#allocation5 + $0x28] sm:$0xff]  ;;  %v1799_v3 = vld [vmem:[#allocation5 + $0x20] sm:$0xff]  ;;  %v1798_v4 = vld [vmem:[#allocation5 + $0x18] sm:$0xff]  ;;  %s2484_s24 = scalar_lea.vmem [#allocation8], %s1877_s27  ;;  %s1851_s29 = smul.u32 104, %s2203_s16 }
  0x34   : > { %v1797_v5 = vld [vmem:[#allocation5 + $0x10] sm:$0xff]  ;;  %v1796_v6 = vld [vmem:[#allocation5 + $0x8] sm:$0xff]  ;;  %v1795_v7 = vld [vmem:[#allocation5] sm:$0xff]  ;;  %s1463_s7 = sshll.u32 %s2484_s24, 4  ;;  %s1451_s16 = scalar_lea.sflag [#allocation4], %s2278_s26  ;;  %s1464_s7 = int_to_ptr.vmem [resolvable:$true] %s1463_s7 }
  0x35   : > { %v2295_v8 = vld [vmem:[%s2284_s5] sm:$0xff]  ;;  %v2298_v9 = vld [vmem:[%s2284_s5 + $0x8] sm:$0xff]  ;;  %v2311_v14 = vld [vmem:[%s2284_s5 + $0x10] sm:$0xff]  ;;  %s1462_s6 = scalar_lea.hbm %s2584_s3, %s1851_s29  ;;  %s2098_s21 = scalar_lea.hbm %s2584_s3, 208 }
  0x36   : > { %v2301_v10 = vld [vmem:[%s2284_s5 + $0x20] sm:$0xff]  ;;  %v2304_v11 = vld [vmem:[%s2284_s5 + $0x28] sm:$0xff]  ;;  %v239_v12 = vpack.c.bf16 %v2298_v9, %v2295_v8  ;;  %v2314_v15 = vld [vmem:[%s2284_s5 + $0x18] sm:$0xff]  ;;  %s1465_s9 = sshll.u32 %s1462_s6, 4  ;;  %s1466_s9 = int_to_ptr.hbm [resolvable:$true] %s1465_s9 }
  0x37   : > { %315 = vmatpush.bf16.msra.mxu0 %v1801_v1  ;;  %1853 = vmatpush.bf16.msra.mxu3 %v1801_v1  ;;  %v241_v13 = vpack.c.bf16 %v2304_v11, %v2301_v10  ;;  %v2317_v16 = vld [vmem:[%s2284_s5 + $0x30] sm:$0xff]  ;;  %v2320_v17 = vld [vmem:[%s2284_s5 + $0x38] sm:$0xff]  ;;  %v240_v18 = vpack.c.bf16 %v2314_v15, %v2311_v14  ;;  %v2327_v20 = vld [vmem:[%s2284_s5 + $0x40] sm:$0xff]  ;;  %s2092_s10 = sshra.s32 %s1466_s9, 4  ;;  %s2093_s10 = int_to_ptr.hbm [resolvable:$true] %s2092_s10 }
  0x38   : > { %v242_v19 = vpack.c.bf16 %v2320_v17, %v2317_v16  ;;  %v2330_v21 = vld [vmem:[%s2284_s5 + $0x48] sm:$0xff]  ;;  %v1809_v24 = vld [vmem:[#allocation5 + $0x70] sm:$0xff]  ;;  %v1808_v25 = vld [vmem:[#allocation5 + $0x68] sm:$0xff]  ;;  %s2094_s25 = scalar_lea.hbm %s2093_s10, 104  ;;  %p2099_p11 = scmp.lt.s32.totalorder %s2093_s10, %s2584_s3 }
  0x39   : > { %v243_v22 = vpack.c.bf16 %v2330_v21, %v2327_v20  ;;  %v1810_v23 = vld [vmem:[#allocation5 + $0x78] sm:$0xff]  ;;  %v2335_v26 = vld [vmem:[%s2284_s5 + $0x50] sm:$0xff]  ;;  %v2338_v27 = vld [vmem:[%s2284_s5 + $0x58] sm:$0xff]  ;;  %p2095_p1 = scmp.ne.s32.totalorder %s2093_s10, %s2094_s25  ;;  %p2100_p9 = scmp.lt.s32.totalorder %s2098_s21, %s2094_s25 }
  0x3a   : > { %473 = vmatpush.bf16.msra.mxu1 %v1810_v23  ;;  %v1807_v28 = vld [vmem:[#allocation5 + $0x60] sm:$0xff]  ;;  %v244_v29 = vpack.c.bf16 %v2338_v27, %v2335_v26  ;;  %v2343_v30 = vld [vmem:[%s2284_s5 + $0x60] sm:$0xff]  ;;  %v1804_v34 = vld [vmem:[#allocation5 + $0x48] sm:$0xff] }
  0x3b   : > { %316 = vmatpush.bf16.msra.mxu0 %v1800_v2  ;;  %1854 = vmatpush.bf16.msra.mxu3 %v1800_v2  ;;  %v245_v31 = vpack.c.bf16 %v2343_v30, %v2343_v30  ;;  %v1806_v32 = vld [vmem:[#allocation5 + $0x58] sm:$0xff]  ;;  %v1805_v33 = vld [vmem:[#allocation5 + $0x50] sm:$0xff]  ;;  %v1803_v35 = vld [vmem:[#allocation5 + $0x40] sm:$0xff]  ;;  %p2096_p4 = pnand %p2095_p1, %p2251_p5  ;;  %p2101_p2 = por %p2100_p9, %p2099_p11 }
  0x3c   : > { %v2347_v37 = vld [vmem:[#allocation7] ss:$0 sm:$0xff]  ;;  %v1826_v59 = vld [vmem:[#allocation5 + $0xf8] sm:$0xff] }
  0x3d   : > { %p2097_p8 = pneg %p2096_p4 }
  0x3e   : > { %474 = vmatpush.bf16.msra.mxu1 %v1809_v24 }
  0x3f   : > { %317 = vmatpush.bf16.msra.mxu0 %v1799_v3  ;;  %1855 = vmatpush.bf16.msra.mxu3 %v1799_v3  ;;  %p2102_p10 = pnand %p2101_p2, %p2097_p8 }
  0x42   : > { %475 = vmatpush.bf16.msra.mxu1 %v1808_v25  ;;  %v1824_v25 = vld [vmem:[#allocation5 + $0xe8] sm:$0xff] }
  0x43   : > { %318 = vmatpush.bf16.msra.mxu0 %v1798_v4  ;;  %1856 = vmatpush.bf16.msra.mxu3 %v1798_v4 }
  0x46   : > { %476 = vmatpush.bf16.msra.mxu1 %v1807_v28  ;;  %v1823_v28 = vld [vmem:[#allocation5 + $0xe0] sm:$0xff] }
  0x47   : > { %319 = vmatpush.bf16.msra.mxu0 %v1797_v5  ;;  %1857 = vmatpush.bf16.msra.mxu3 %v1797_v5  ;;  %v1825_v5 = vld [vmem:[#allocation5 + $0xf0] sm:$0xff] }
  0x4a   : > { %477 = vmatpush.bf16.msra.mxu1 %v1806_v32 }
  0x4b   : > { %320 = vmatpush.bf16.msra.mxu0 %v1796_v6  ;;  %1858 = vmatpush.bf16.msra.mxu3 %v1796_v6 }
  0x4e   : > { %478 = vmatpush.bf16.msra.mxu1 %v1805_v33  ;;  %v1822_v33 = vld [vmem:[#allocation5 + $0xd8] sm:$0xff] }
  0x4f   : > { %321 = vmatpush.bf16.msra.mxu0 %v1795_v7  ;;  %1859 = vmatpush.bf16.msra.mxu3 %v1795_v7 }
  0x52   : > { %322 = vmatmul.bf16.vlgmr.msra.gmra.mxu0 %v239_v12  ;;  %332 = vmatmul.bf16.vlgmr.msra.gmra.mxu3 %v241_v13 }
  0x53   : > { %479 = vmatpush.bf16.msra.mxu1 %v1804_v34  ;;  %745 = vmatpush.bf16.msrb.mxu3 %v1826_v59  ;;  %v1813_v59 = vld [vmem:[#allocation5 + $0x90] sm:$0xff] }
  0x57   : > { %480 = vmatpush.bf16.msra.mxu1 %v1803_v35  ;;  %746 = vmatpush.bf16.msrb.mxu3 %v1825_v5 }
  0x5b   : > { %747 = vmatpush.bf16.msrb.mxu3 %v1824_v25 }
  0x5f   : > { %748 = vmatpush.bf16.msrb.mxu3 %v1823_v28 }
  0x62   : > { %327 = vmatmul.bf16.gmra.mxu0 %v240_v18  ;;  %337 = vmatmul.bf16.gmra.mxu3 %v242_v19 }
  0x63   : > { %749 = vmatpush.bf16.msrb.mxu3 %v1822_v33 }
  0x72   : > { %342 = vmatmul.bf16.gmra.mxu3 %v243_v22 }
  0x82   : > { %347 = vmatmul.bf16.gmra.mxu3 %v244_v29 }
  0x92   : > { %352 = vmatmul.bf16.gmra.mxu3 %v245_v31 }
  0xcf   : > { %v323_v36 = vpop.f32.mrf.mxu0 }
  0xd0   : > { %v324_v38 = vadd.f32 %v2347_v37, %v323_v36 }
  0xd2   : > { %v370_v41 = vmul.f32 0.01, %v324_v38  ;;  %vm357_vm0 = vcmp.gt.f32.partialorder %v324_v38, 0.0 }
  0xd4   : > { %v383_v44 = vsel %vm357_vm0, %v324_v38, %v370_v41  ;;  %v1818_v41 = vld [vmem:[#allocation5 + $0xb8] sm:$0xff] }
  0xd5   : > { %v333_v39 = vpop.f32.mrf.mxu3  ;;  %632 = vmatpush.bf16.msra.mxu2 %v1818_v41 }
  0xd6   : > { %v334_v60 = vadd.f32 %v2347_v37, %v333_v39 }
  0xd7   : > { %v325_v40 = vpop.f32.mrf.mxu0 }
  0xd8   : > { %v326_v42 = vadd.f32 %v2347_v37, %v325_v40  ;;  %v374_v63 = vmul.f32 0.01, %v334_v60  ;;  %vm361_vm4 = vcmp.gt.f32.partialorder %v334_v60, 0.0 }
  0xda   : > { %v371_v43 = vmul.f32 0.01, %v326_v42  ;;  %vm358_vm1 = vcmp.gt.f32.partialorder %v326_v42, 0.0  ;;  %v387_v1 = vsel %vm361_vm4, %v334_v60, %v374_v63  ;;  %v1819_v60 = vld [vmem:[#allocation5 + $0xc0] sm:$0xff] }
  0xdc   : > { %v384_v45 = vsel %vm358_vm1, %v326_v42, %v371_v43  ;;  %v1821_v42 = vld [vmem:[#allocation5 + $0xd0] sm:$0xff] }
  0xdd   : > { %v396_v46 = vpack.c.bf16 %v384_v45, %v383_v44  ;;  %v335_v47 = vpop.f32.mrf.mxu3  ;;  %750 = vmatpush.bf16.msrb.mxu3 %v1821_v42  ;;  %v1817_v43 = vld [vmem:[#allocation5 + $0xb0] sm:$0xff]  ;;  %v1820_v44 = vld [vmem:[#allocation5 + $0xc8] sm:$0xff] }
  0xde   : > { %v336_v61 = vadd.f32 %v2347_v37, %v335_v47  ;;  %633 = vmatpush.bf16.msra.mxu2 %v1817_v43  ;;  %v1816_v47 = vld [vmem:[#allocation5 + $0xa8] sm:$0xff] }
  0xdf   : > { %v328_v48 = vpop.f32.mrf.mxu0  ;;  %481 = vmatmul.bf16.vlgmr.msra.gmra.mxu1 %v396_v46 }
  0xe0   : > { %v329_v49 = vadd.f32 %v2347_v37, %v328_v48  ;;  %v375_v0 = vmul.f32 0.01, %v336_v61  ;;  %vm362_vm5 = vcmp.gt.f32.partialorder %v336_v61, 0.0 }
  0xe1   : > { %751 = vmatpush.bf16.msrb.mxu3 %v1820_v44 }
  0xe2   : > { %v372_v52 = vmul.f32 0.01, %v329_v49  ;;  %vm359_vm2 = vcmp.gt.f32.partialorder %v329_v49, 0.0  ;;  %v388_v2 = vsel %vm362_vm5, %v336_v61, %v375_v0  ;;  %634 = vmatpush.bf16.msra.mxu2 %v1816_v47  ;;  %v1812_v61 = vld [vmem:[#allocation5 + $0x88] sm:$0xff]  ;;  %v2362_v0 = vld [vmem:[#allocation7 + $0x1] ss:$0 sm:$0xff] }
  0xe3   : > { %v398_v3 = vpack.c.bf16 %v388_v2, %v387_v1 }
  0xe4   : > { %v385_v55 = vsel %vm359_vm2, %v329_v49, %v372_v52 }
  0xe5   : > { %v338_v50 = vpop.f32.mrf.mxu3  ;;  %752 = vmatpush.bf16.msrb.mxu3 %v1819_v60 }
  0xe6   : > { %v339_v6 = vadd.f32 %v2347_v37, %v338_v50  ;;  %v1815_v50 = vld [vmem:[#allocation5 + $0xa0] sm:$0xff] }
  0xe7   : > { %v330_v51 = vpop.f32.mrf.mxu0  ;;  %635 = vmatpush.bf16.msra.mxu2 %v1815_v50 }
  0xe8   : > { %v331_v53 = vadd.f32 %v2347_v37, %v330_v51  ;;  %v376_v13 = vmul.f32 0.01, %v339_v6  ;;  %vm363_vm6 = vcmp.gt.f32.partialorder %v339_v6, 0.0 }
  0xea   : > { %v373_v54 = vmul.f32 0.01, %v331_v53  ;;  %vm360_vm3 = vcmp.gt.f32.partialorder %v331_v53, 0.0  ;;  %v389_v19 = vsel %vm363_vm6, %v339_v6, %v376_v13 }
  0xec   : > { %v386_v56 = vsel %vm360_vm3, %v331_v53, %v373_v54 }
  0xed   : > { %v397_v57 = vpack.c.bf16 %v386_v56, %v385_v55  ;;  %v340_v58 = vpop.f32.mrf.mxu3 }
  0xee   : > { %v341_v7 = vadd.f32 %v2347_v37, %v340_v58  ;;  %v1814_v58 = vld [vmem:[#allocation5 + $0x98] sm:$0xff] }
  0xef   : > { %486 = vmatmul.bf16.gmra.mxu1 %v397_v57  ;;  %636 = vmatpush.bf16.msra.mxu2 %v1814_v58 }
  0xf0   : > { %v377_v18 = vmul.f32 0.01, %v341_v7  ;;  %vm364_vm7 = vcmp.gt.f32.partialorder %v341_v7, 0.0 }
  0xf2   : > { %v390_v22 = vsel %vm364_vm7, %v341_v7, %v377_v18 }
  0xf3   : > { %v399_v23 = vpack.c.bf16 %v390_v22, %v389_v19  ;;  %637 = vmatpush.bf16.msra.mxu2 %v1813_v59  ;;  %v1834_v59 = vld [vmem:[#allocation5 + $0x138] sm:$0xff] }
  0xf4   : > { %930 = vmatpush.bf16.msrb.mxu0 %v1834_v59 }
  0xf5   : > { %v343_v62 = vpop.f32.mrf.mxu3 }
  0xf6   : > { %v344_v29 = vadd.f32 %v2347_v37, %v343_v62  ;;  %v1811_v62 = vld [vmem:[#allocation5 + $0x80] sm:$0xff] }
  0xf7   : > { %638 = vmatpush.bf16.msra.mxu2 %v1812_v61 }
  0xf8   : > { %v378_v34 = vmul.f32 0.01, %v344_v29  ;;  %vm365_vm8 = vcmp.gt.f32.partialorder %v344_v29, 0.0 }
  0xfa   : > { %v391_v36 = vsel %vm365_vm8, %v344_v29, %v378_v34 }
  0xfb   : > { %639 = vmatpush.bf16.msra.mxu2 %v1811_v62 }
  0xfd   : > { %v345_v4 = vpop.f32.mrf.mxu3 }
  0xfe   : > { %v346_v31 = vadd.f32 %v2347_v37, %v345_v4 }
  0xff   : > { %491 = vmatmul.bf16.gmra.mxu1 %v398_v3 }
 0x100   : > { %v379_v35 = vmul.f32 0.01, %v346_v31  ;;  %vm366_vm9 = vcmp.gt.f32.partialorder %v346_v31, 0.0 }
 0x102   : > { %v392_v38 = vsel %vm366_vm9, %v346_v31, %v379_v35 }
 0x103   : > { %v400_v39 = vpack.c.bf16 %v392_v38, %v391_v36 }
 0x105   : > { %v348_v12 = vpop.f32.mrf.mxu3 }
 0x106   : > { %v349_v45 = vadd.f32 %v2347_v37, %v348_v12 }
 0x108   : > { %v380_v48 = vmul.f32 0.01, %v349_v45  ;;  %vm367_vm10 = vcmp.gt.f32.partialorder %v349_v45, 0.0 }
 0x10a   : > { %v393_v51 = vsel %vm367_vm10, %v349_v45, %v380_v48 }
 0x10d   : > { %v350_v24 = vpop.f32.mrf.mxu3 }
 0x10e   : > { %v351_v46 = vadd.f32 %v2347_v37, %v350_v24 }
 0x10f   : > { %496 = vmatmul.bf16.gmra.mxu1 %v399_v23 }
 0x110   : > { %v381_v49 = vmul.f32 0.01, %v351_v46  ;;  %vm368_vm11 = vcmp.gt.f32.partialorder %v351_v46, 0.0 }
 0x112   : > { %v394_v52 = vsel %vm368_vm11, %v351_v46, %v381_v49 }
 0x113   : > { %v401_v53 = vpack.c.bf16 %v394_v52, %v393_v51 }
 0x115   : > { %v353_v32 = vpop.f32.mrf.mxu3 }
 0x116   : > { %v354_v54 = vadd.f32 %v2347_v37, %v353_v32 }
 0x118   : > { %v382_v55 = vmul.f32 0.01, %v354_v54  ;;  %vm369_vm12 = vcmp.gt.f32.partialorder %v354_v54, 0.0 }
 0x11a   : > { %v395_v56 = vsel %vm369_vm12, %v354_v54, %v382_v55 }
 0x11b   : > { %v402_v57 = vpack.c.bf16 %v395_v56, %v395_v56 }
 0x11d   : > { %v355_v40 = vpop.f32.mrf.mxu3 }
 0x11f   : > { %501 = vmatmul.bf16.gmra.mxu1 %v400_v39 }
 0x12f   : > { %506 = vmatmul.bf16.gmra.mxu1 %v401_v53 }
 0x13f   : > { %511 = vmatmul.bf16.gmra.mxu1 %v402_v57 }
 0x15c   : > { %v482_v63 = vpop.f32.mrf.mxu1 }
 0x15d   : > { %v483_v37 = vadd.f32 %v2362_v0, %v482_v63 }
 0x15f   : > { %v529_v2 = vmul.f32 0.01, %v483_v37  ;;  %vm516_vm13 = vcmp.gt.f32.partialorder %v483_v37, 0.0 }
 0x161   : > { %v542_v5 = vsel %vm516_vm13, %v483_v37, %v529_v2 }
 0x164   : > { %v484_v1 = vpop.f32.mrf.mxu1 }
 0x165   : > { %v485_v3 = vadd.f32 %v2362_v0, %v484_v1 }
 0x167   : > { %v530_v4 = vmul.f32 0.01, %v485_v3  ;;  %vm517_vm14 = vcmp.gt.f32.partialorder %v485_v3, 0.0 }
 0x169   : > { %v543_v6 = vsel %vm517_vm14, %v485_v3, %v530_v4 }
 0x16a   : > { %v555_v7 = vpack.c.bf16 %v543_v6, %v542_v5 }
 0x16c   : > { %v487_v12 = vpop.f32.mrf.mxu1  ;;  %640 = vmatmul.bf16.vlgmr.msra.gmra.mxu2 %v555_v7  ;;  %753 = vmatmul.bf16.vlgmr.msrb.gmra.mxu3 %v555_v7 }
 0x16d   : > { %v488_v13 = vadd.f32 %v2362_v0, %v487_v12 }
 0x16f   : > { %v531_v19 = vmul.f32 0.01, %v488_v13  ;;  %vm518_vm15 = vcmp.gt.f32.partialorder %v488_v13, 0.0 }
 0x171   : > { %v544_v24 = vsel %vm518_vm15, %v488_v13, %v531_v19  ;;  %v1832_v19 = vld [vmem:[#allocation5 + $0x128] sm:$0xff] }
 0x174   : > { %v489_v18 = vpop.f32.mrf.mxu1 }
 0x175   : > { %v490_v22 = vadd.f32 %v2362_v0, %v489_v18  ;;  %v1833_v18 = vld [vmem:[#allocation5 + $0x130] sm:$0xff] }
 0x176   : > { %931 = vmatpush.bf16.msrb.mxu0 %v1833_v18 }
 0x177   : > { %v532_v23 = vmul.f32 0.01, %v490_v22  ;;  %vm519_vm0 = vcmp.gt.f32.partialorder %v490_v22, 0.0 }
 0x179   : > { %v545_v25 = vsel %vm519_vm0, %v490_v22, %v532_v23  ;;  %v1831_v22 = vld [vmem:[#allocation5 + $0x120] sm:$0xff]  ;;  %v1830_v23 = vld [vmem:[#allocation5 + $0x118] sm:$0xff] }
 0x17a   : > { %v556_v28 = vpack.c.bf16 %v545_v25, %v544_v24  ;;  %932 = vmatpush.bf16.msrb.mxu0 %v1832_v19  ;;  %v1829_v24 = vld [vmem:[#allocation5 + $0x110] sm:$0xff]  ;;  %v1828_v25 = vld [vmem:[#allocation5 + $0x108] sm:$0xff] }
 0x17c   : > { %v492_v29 = vpop.f32.mrf.mxu1  ;;  %645 = vmatmul.bf16.gmra.mxu2 %v556_v28  ;;  %758 = vmatmul.bf16.gmra.mxu3 %v556_v28  ;;  %v2377_v28 = vld [vmem:[#allocation7 + $0x2] ss:$0 sm:$0xff] }
 0x17d   : > { %v493_v31 = vadd.f32 %v2362_v0, %v492_v29  ;;  %v2379_v29 = vld [vmem:[#allocation7 + $0x3] ss:$0 sm:$0xff] }
 0x17e   : > { %933 = vmatpush.bf16.msrb.mxu0 %v1831_v22 }
 0x17f   : > { %v533_v33 = vmul.f32 0.01, %v493_v31  ;;  %vm520_vm1 = vcmp.gt.f32.partialorder %v493_v31, 0.0 }
 0x181   : > { %v546_v36 = vsel %vm520_vm1, %v493_v31, %v533_v33 }
 0x182   : > { %934 = vmatpush.bf16.msrb.mxu0 %v1830_v23 }
 0x184   : > { %v494_v32 = vpop.f32.mrf.mxu1 }
 0x185   : > { %v495_v34 = vadd.f32 %v2362_v0, %v494_v32 }
 0x186   : > { %935 = vmatpush.bf16.msrb.mxu0 %v1829_v24 }
 0x187   : > { %v534_v35 = vmul.f32 0.01, %v495_v34  ;;  %vm521_vm2 = vcmp.gt.f32.partialorder %v495_v34, 0.0 }
 0x189   : > { %v547_v38 = vsel %vm521_vm2, %v495_v34, %v534_v35 }
 0x18a   : > { %v557_v39 = vpack.c.bf16 %v547_v38, %v546_v36  ;;  %936 = vmatpush.bf16.msrb.mxu0 %v1828_v25 }
 0x18c   : > { %v497_v40 = vpop.f32.mrf.mxu1  ;;  %650 = vmatmul.bf16.gmra.mxu2 %v557_v39  ;;  %763 = vmatmul.bf16.gmra.mxu3 %v557_v39 }
 0x18d   : > { %v498_v41 = vadd.f32 %v2362_v0, %v497_v40 }
 0x18f   : > { %v535_v43 = vmul.f32 0.01, %v498_v41  ;;  %vm522_vm3 = vcmp.gt.f32.partialorder %v498_v41, 0.0 }
 0x191   : > { %v548_v46 = vsel %vm522_vm3, %v498_v41, %v535_v43 }
 0x194   : > { %v499_v42 = vpop.f32.mrf.mxu1 }
 0x195   : > { %v500_v44 = vadd.f32 %v2362_v0, %v499_v42 }
 0x197   : > { %v536_v45 = vmul.f32 0.01, %v500_v44  ;;  %vm523_vm4 = vcmp.gt.f32.partialorder %v500_v44, 0.0 }
 0x199   : > { %v549_v47 = vsel %vm523_vm4, %v500_v44, %v536_v45 }
 0x19a   : > { %v558_v48 = vpack.c.bf16 %v549_v47, %v548_v46 }
 0x19c   : > { %v502_v49 = vpop.f32.mrf.mxu1  ;;  %655 = vmatmul.bf16.gmra.mxu2 %v558_v48  ;;  %768 = vmatmul.bf16.gmra.mxu3 %v558_v48 }
 0x19d   : > { %v503_v50 = vadd.f32 %v2362_v0, %v502_v49 }
 0x19f   : > { %v537_v52 = vmul.f32 0.01, %v503_v50  ;;  %vm524_vm5 = vcmp.gt.f32.partialorder %v503_v50, 0.0 }
 0x1a1   : > { %v550_v55 = vsel %vm524_vm5, %v503_v50, %v537_v52 }
 0x1a4   : > { %v504_v51 = vpop.f32.mrf.mxu1 }
 0x1a5   : > { %v505_v53 = vadd.f32 %v2362_v0, %v504_v51 }
 0x1a7   : > { %v538_v54 = vmul.f32 0.01, %v505_v53  ;;  %vm525_vm6 = vcmp.gt.f32.partialorder %v505_v53, 0.0 }
 0x1a9   : > { %v551_v56 = vsel %vm525_vm6, %v505_v53, %v538_v54 }
 0x1aa   : > { %v559_v57 = vpack.c.bf16 %v551_v56, %v550_v55 }
 0x1ac   : > { %v507_v58 = vpop.f32.mrf.mxu1  ;;  %660 = vmatmul.bf16.gmra.mxu2 %v559_v57  ;;  %773 = vmatmul.bf16.gmra.mxu3 %v559_v57 }
 0x1ad   : > { %v508_v60 = vadd.f32 %v2362_v0, %v507_v58 }
 0x1af   : > { %v539_v62 = vmul.f32 0.01, %v508_v60  ;;  %vm526_vm7 = vcmp.gt.f32.partialorder %v508_v60, 0.0 }
 0x1b1   : > { %v552_v1 = vsel %vm526_vm7, %v508_v60, %v539_v62 }
 0x1b4   : > { %v509_v61 = vpop.f32.mrf.mxu1 }
 0x1b5   : > { %v510_v63 = vadd.f32 %v2362_v0, %v509_v61 }
 0x1b7   : > { %v540_v37 = vmul.f32 0.01, %v510_v63  ;;  %vm527_vm8 = vcmp.gt.f32.partialorder %v510_v63, 0.0 }
 0x1b9   : > { %v553_v2 = vsel %vm527_vm8, %v510_v63, %v540_v37 }
 0x1ba   : > { %v560_v3 = vpack.c.bf16 %v553_v2, %v552_v1 }
 0x1bc   : > { %665 = vmatmul.bf16.gmra.mxu2 %v560_v3  ;;  %778 = vmatmul.bf16.gmra.mxu3 %v560_v3  ;;  %v512_v4 = vpop.f32.mrf.mxu1 }
 0x1bd   : > { %v513_v5 = vadd.f32 %v2362_v0, %v512_v4  ;;  %v1827_v0 = vld [vmem:[#allocation5 + $0x100] sm:$0xff] }
 0x1be   : > { %937 = vmatpush.bf16.msrb.mxu0 %v1827_v0 }
 0x1bf   : > { %v541_v6 = vmul.f32 0.01, %v513_v5  ;;  %vm528_vm9 = vcmp.gt.f32.partialorder %v513_v5, 0.0 }
 0x1c1   : > { %v554_v12 = vsel %vm528_vm9, %v513_v5, %v541_v6 }
 0x1c2   : > { %v561_v13 = vpack.c.bf16 %v554_v12, %v554_v12 }
 0x1c4   : > { %v514_v7 = vpop.f32.mrf.mxu1 }
 0x1cc   : > { %670 = vmatmul.bf16.gmra.mxu2 %v561_v13  ;;  %783 = vmatmul.bf16.gmra.mxu3 %v561_v13 }
 0x1ef   : > { %v641_v31 = vpop.f32.mrf.mxu2  ;;  %v754_v32 = vpop.f32.mrf.mxu3 }
 0x1f0   : > { %v642_v33 = vadd.f32 %v2377_v28, %v641_v31  ;;  %v755_v34 = vadd.f32 %v2379_v29, %v754_v32 }
 0x1f2   : > { %v788_v35 = vmul.f32 0.5, %v755_v34  ;;  %1356 = vrot.lane.b32.xlu1 %v755_v34, %s2158_s18  ;;  %1304 = vrot.lane.b32.xlu0 %v642_v33, %s2159_s23 }
 0x1f4   : > { %v801_v36 = vmul.f32 1.442695, %v788_v35 }
 0x1f6   : > { %1962 = vpow2.f32 %v801_v36 }
 0x1f7   : > { %v643_v38 = vpop.f32.mrf.mxu2  ;;  %v756_v39 = vpop.f32.mrf.mxu3 }
 0x1f8   : > { %v644_v40 = vadd.f32 %v2377_v28, %v643_v38  ;;  %v757_v41 = vadd.f32 %v2379_v29, %v756_v39 }
 0x1fa   : > { %v789_v42 = vmul.f32 0.5, %v757_v41  ;;  %1358 = vrot.lane.b32.xlu2 %v757_v41, %s2158_s18  ;;  %1306 = vrot.lane.b32.xlu0 %v644_v40, %s2159_s23 }
 0x1fc   : > { %v803_v43 = vmul.f32 1.442695, %v789_v42  ;;  %v1963_v46 = vpop.eup %1962 }
 0x1fd   : > { %v827_v50 = vmul.f32 %v1963_v46, %v2295_v8 }
 0x1fe   : > { %1964 = vpow2.f32 %v803_v43 }
 0x1ff   : > { %v646_v44 = vpop.f32.mrf.mxu2  ;;  %v759_v45 = vpop.f32.mrf.mxu3  ;;  %v840_v56 = vadd.f32 %v827_v50, %v642_v33 }
 0x200   : > { %v647_v47 = vadd.f32 %v2377_v28, %v646_v44  ;;  %v760_v48 = vadd.f32 %v2379_v29, %v759_v45 }
 0x202   : > { %v790_v49 = vmul.f32 0.5, %v760_v48  ;;  %1308 = vrot.lane.b32.xlu1 %v647_v47, %s2159_s23  ;;  %1360 = vrot.lane.b32.xlu0 %v760_v48, %s2158_s18 }
 0x204   : > { %v1965_v51 = vpop.eup %1964  ;;  %v805_v53 = vmul.f32 1.442695, %v790_v49 }
 0x205   : > { %v828_v52 = vmul.f32 %v1965_v51, %v2298_v9 }
 0x206   : > { %1966 = vpow2.f32 %v805_v53 }
 0x207   : > { %v648_v54 = vpop.f32.mrf.mxu2  ;;  %v761_v55 = vpop.f32.mrf.mxu3  ;;  %v841_v57 = vadd.f32 %v828_v52, %v644_v40  ;;  %v1841_v40 = vld [vmem:[#allocation5 + $0x170] sm:$0xff] }
 0x208   : > { %v649_v58 = vadd.f32 %v2377_v28, %v648_v54  ;;  %v762_v59 = vadd.f32 %v2379_v29, %v761_v55  ;;  %v1840_v54 = vld [vmem:[#allocation5 + $0x168] sm:$0xff] }
 0x209   : > { %v853_v60 = vpack.c.bf16 %v841_v57, %v840_v56 }
 0x20a   : > { %v791_v61 = vmul.f32 0.5, %v762_v59  ;;  %1310 = vrot.lane.b32.xlu1 %v649_v58, %s2159_s23 }
 0x20b   : > { %938 = vmatmul.bf16.vlgmr.msrb.gmra.mxu0 %v853_v60 }
 0x20c   : > { %v807_v62 = vmul.f32 1.442695, %v791_v61  ;;  %v1967_v9 = vpop.eup %1966 }
 0x20d   : > { %v829_v3 = vmul.f32 %v1967_v9, %v2311_v14  ;;  %v1842_v14 = vld [vmem:[#allocation5 + $0x178] sm:$0xff] }
 0x20e   : > { %1968 = vpow2.f32 %v807_v62  ;;  %1860 = vmatpush.bf16.msrb.mxu1 %v1842_v14  ;;  %1089 = vmatpush.bf16.msra.mxu0 %v1842_v14 }
 0x20f   : > { %v651_v8 = vpop.f32.mrf.mxu2  ;;  %v764_v63 = vpop.f32.mrf.mxu3  ;;  %v842_v13 = vadd.f32 %v829_v3, %v647_v47 }
 0x210   : > { %v652_v37 = vadd.f32 %v2377_v28, %v651_v8  ;;  %v765_v1 = vadd.f32 %v2379_v29, %v764_v63 }
 0x212   : > { %v792_v2 = vmul.f32 0.5, %v765_v1  ;;  %1312 = vrot.lane.b32.xlu2 %v652_v37, %s2159_s23  ;;  %1362 = vrot.lane.b32.xlu1 %v762_v59, %s2158_s18 }
 0x213   : > { %1861 = vmatpush.bf16.msrb.mxu1 %v1841_v40  ;;  %1090 = vmatpush.bf16.msra.mxu0 %v1841_v40 }
 0x214   : > { %v1969_v4 = vpop.eup %1968  ;;  %v809_v6 = vmul.f32 1.442695, %v792_v2 }
 0x215   : > { %v830_v5 = vmul.f32 %v1969_v4, %v2314_v15 }
 0x216   : > { %1970 = vpow2.f32 %v809_v6 }
 0x217   : > { %v653_v7 = vpop.f32.mrf.mxu2  ;;  %v766_v12 = vpop.f32.mrf.mxu3  ;;  %v843_v18 = vadd.f32 %v830_v5, %v649_v58  ;;  %1862 = vmatpush.bf16.msrb.mxu1 %v1840_v54  ;;  %1091 = vmatpush.bf16.msra.mxu0 %v1840_v54 }
 0x218   : > { %v767_v19 = vadd.f32 %v2379_v29, %v766_v12  ;;  %v654_v31 = vadd.f32 %v2377_v28, %v653_v7 }
 0x219   : > { %v854_v22 = vpack.c.bf16 %v843_v18, %v842_v13 }
 0x21a   : > { %v793_v23 = vmul.f32 0.5, %v767_v19  ;;  %1364 = vrot.lane.b32.xlu2 %v765_v1, %s2158_s18  ;;  %1366 = vrot.lane.b32.xlu0 %v767_v19, %s2158_s18 }
 0x21b   : > { %943 = vmatmul.bf16.gmra.mxu0 %v854_v22 }
 0x21c   : > { %v811_v24 = vmul.f32 1.442695, %v793_v23  ;;  %v1971_v0 = vpop.eup %1970 }
 0x21d   : > { %v831_v35 = vmul.f32 %v1971_v0, %v2301_v10 }
 0x21e   : > { %1972 = vpow2.f32 %v811_v24 }
 0x21f   : > { %v656_v25 = vpop.f32.mrf.mxu2  ;;  %v769_v15 = vpop.f32.mrf.mxu3  ;;  %v844_v43 = vadd.f32 %v831_v35, %v652_v37 }
 0x220   : > { %v657_v32 = vadd.f32 %v2377_v28, %v656_v25  ;;  %v770_v33 = vadd.f32 %v2379_v29, %v769_v15 }
 0x222   : > { %v794_v34 = vmul.f32 0.5, %v770_v33  ;;  %1314 = vrot.lane.b32.xlu2 %v654_v31, %s2159_s23  ;;  %1368 = vrot.lane.b32.xlu1 %v770_v33, %s2158_s18 }
 0x223   : > { %1316 = vrot.lane.b32.xlu0 %v657_v32, %s2159_s23 }
 0x224   : > { %v1973_v36 = vpop.eup %1972  ;;  %v813_v39 = vmul.f32 1.442695, %v794_v34 }
 0x225   : > { %v832_v38 = vmul.f32 %v1973_v36, %v2304_v11 }
 0x226   : > { %1974 = vpow2.f32 %v813_v39 }
 0x227   : > { %v658_v41 = vpop.f32.mrf.mxu2  ;;  %v771_v42 = vpop.f32.mrf.mxu3  ;;  %v845_v44 = vadd.f32 %v832_v38, %v654_v31 }
 0x228   : > { %v659_v45 = vadd.f32 %v2377_v28, %v658_v41  ;;  %v772_v46 = vadd.f32 %v2379_v29, %v771_v42 }
 0x229   : > { %v855_v47 = vpack.c.bf16 %v845_v44, %v844_v43 }
 0x22a   : > { %v795_v48 = vmul.f32 0.5, %v772_v46  ;;  %1370 = vrot.lane.b32.xlu2 %v772_v46, %s2158_s18  ;;  %1318 = vrot.lane.b32.xlu1 %v659_v45, %s2159_s23  ;;  %v1837_v46 = vld [vmem:[#allocation5 + $0x150] sm:$0xff] }
 0x22b   : > { %948 = vmatmul.bf16.gmra.mxu0 %v855_v47 }
 0x22c   : > { %v815_v10 = vmul.f32 1.442695, %v795_v48  ;;  %v1975_v50 = vpop.eup %1974 }
 0x22d   : > { %v833_v55 = vmul.f32 %v1975_v50, %v2317_v16  ;;  %v1839_v16 = vld [vmem:[#allocation5 + $0x160] sm:$0xff] }
 0x22e   : > { %1976 = vpow2.f32 %v815_v10  ;;  %1863 = vmatpush.bf16.msrb.mxu1 %v1839_v16  ;;  %1092 = vmatpush.bf16.msra.mxu0 %v1839_v16  ;;  %v1836_v10 = vld [vmem:[#allocation5 + $0x148] sm:$0xff] }
 0x22f   : > { %v661_v11 = vpop.f32.mrf.mxu2  ;;  %v774_v49 = vpop.f32.mrf.mxu3  ;;  %v846_v61 = vadd.f32 %v833_v55, %v657_v32 }
 0x230   : > { %v662_v51 = vadd.f32 %v2377_v28, %v661_v11  ;;  %v775_v52 = vadd.f32 %v2379_v29, %v774_v49  ;;  %v2446_v49 = vld [vmem:[#allocation7 + $0x4] ss:$0 sm:$0xff] }
 0x232   : > { %v796_v53 = vmul.f32 0.5, %v775_v52  ;;  %1320 = vrot.lane.b32.xlu2 %v662_v51, %s2159_s23  ;;  %1372 = vrot.lane.b32.xlu0 %v775_v52, %s2158_s18 }
 0x234   : > { %v1977_v56 = vpop.eup %1976  ;;  %v817_v58 = vmul.f32 1.442695, %v796_v53 }
 0x235   : > { %v834_v57 = vmul.f32 %v1977_v56, %v2320_v17 }
 0x236   : > { %1978 = vpow2.f32 %v817_v58 }
 0x237   : > { %v663_v59 = vpop.f32.mrf.mxu2  ;;  %v776_v60 = vpop.f32.mrf.mxu3  ;;  %v847_v62 = vadd.f32 %v834_v57, %v659_v45 }
 0x238   : > { %v664_v8 = vadd.f32 %v2377_v28, %v663_v59  ;;  %v777_v63 = vadd.f32 %v2379_v29, %v776_v60 }
 0x239   : > { %v856_v9 = vpack.c.bf16 %v847_v62, %v846_v61 }
 0x23a   : > { %v797_v37 = vmul.f32 0.5, %v777_v63  ;;  %1374 = vrot.lane.b32.xlu1 %v777_v63, %s2158_s18  ;;  %1322 = vrot.lane.b32.xlu0 %v664_v8, %s2159_s23 }
 0x23b   : > { %953 = vmatmul.bf16.gmra.mxu0 %v856_v9 }
 0x23c   : > { %v819_v1 = vmul.f32 1.442695, %v797_v37  ;;  %v1979_v3 = vpop.eup %1978 }
 0x23d   : > { %v835_v7 = vmul.f32 %v1979_v3, %v2327_v20  ;;  %v1838_v20 = vld [vmem:[#allocation5 + $0x158] sm:$0xff] }
 0x23e   : > { %1980 = vpow2.f32 %v819_v1  ;;  %1864 = vmatpush.bf16.msrb.mxu1 %v1838_v20  ;;  %1093 = vmatpush.bf16.msra.mxu0 %v1838_v20  ;;  %v1847_v20 = vld [vmem:[#allocation5 + $0x1a0] sm:$0xff] }
 0x23f   : > { %v666_v17 = vpop.f32.mrf.mxu2  ;;  %v779_v2 = vpop.f32.mrf.mxu3  ;;  %v848_v23 = vadd.f32 %v835_v7, %v662_v51 }
 0x240   : > { %v667_v4 = vadd.f32 %v2377_v28, %v666_v17  ;;  %v780_v5 = vadd.f32 %v2379_v29, %v779_v2 }
 0x242   : > { %v798_v6 = vmul.f32 0.5, %v780_v5  ;;  %1324 = vrot.lane.b32.xlu1 %v667_v4, %s2159_s23  ;;  %1865 = vmatpush.bf16.msrb.mxu1 %v1837_v46 }
 0x243   : > { %1094 = vmatpush.bf16.msra.mxu0 %v1837_v46 }
 0x244   : > { %v1981_v12 = vpop.eup %1980  ;;  %v821_v18 = vmul.f32 1.442695, %v798_v6 }
 0x245   : > { %v836_v13 = vmul.f32 %v1981_v12, %v2330_v21 }
 0x246   : > { %1982 = vpow2.f32 %v821_v18  ;;  %1866 = vmatpush.bf16.msrb.mxu1 %v1836_v10 }
 0x247   : > { %v668_v19 = vpop.f32.mrf.mxu2  ;;  %v781_v22 = vpop.f32.mrf.mxu3  ;;  %v849_v24 = vadd.f32 %v836_v13, %v664_v8  ;;  %1095 = vmatpush.bf16.msra.mxu0 %v1836_v10  ;;  %v1850_v8 = vld [vmem:[#allocation5 + $0x1b8] sm:$0xff] }
 0x248   : > { %v669_v14 = vadd.f32 %v2377_v28, %v668_v19  ;;  %v782_v25 = vadd.f32 %v2379_v29, %v781_v22  ;;  %1868 = vmatpush.bf16.msrb.mxu2 %v1850_v8 }
 0x249   : > { %v857_v15 = vpack.c.bf16 %v849_v24, %v848_v23 }
 0x24a   : > { %v799_v0 = vmul.f32 0.5, %v782_v25  ;;  %1326 = vrot.lane.b32.xlu2 %v669_v14, %s2159_s23 }
 0x24b   : > { %958 = vmatmul.bf16.gmra.mxu0 %v857_v15 }
 0x24c   : > { %v823_v31 = vmul.f32 1.442695, %v799_v0  ;;  %v1983_v33 = vpop.eup %1982 }
 0x24d   : > { %v837_v38 = vmul.f32 %v1983_v33, %v2335_v26 }
 0x24e   : > { %1984 = vpow2.f32 %v823_v31 }
 0x24f   : > { %v671_v21 = vpop.f32.mrf.mxu2  ;;  %v784_v32 = vpop.f32.mrf.mxu3  ;;  %v850_v42 = vadd.f32 %v837_v38, %v667_v4 }
 0x250   : > { %v672_v34 = vadd.f32 %v2377_v28, %v671_v21  ;;  %v785_v35 = vadd.f32 %v2379_v29, %v784_v32 }
 0x252   : > { %1376 = vrot.lane.b32.xlu2 %v780_v5, %s2158_s18  ;;  %1328 = vrot.lane.b32.xlu0 %v672_v34, %s2159_s23  ;;  %v800_v36 = vmul.f32 0.5, %v785_v35  ;;  %v1849_v5 = vld [vmem:[#allocation5 + $0x1b0] sm:$0xff] }
 0x253   : > { %1380 = vrot.lane.b32.xlu1 %v785_v35, %s2158_s18  ;;  %1869 = vmatpush.bf16.msrb.mxu2 %v1849_v5 }
 0x254   : > { %v1985_v39 = vpop.eup %1984  ;;  %v825_v40 = vmul.f32 1.442695, %v800_v36 }
 0x255   : > { %v838_v41 = vmul.f32 %v1985_v39, %v2338_v27  ;;  %v1835_v27 = vld [vmem:[#allocation5 + $0x140] sm:$0xff] }
 0x256   : > { %1986 = vpow2.f32 %v825_v40  ;;  %1096 = vmatpush.bf16.msra.mxu0 %v1835_v27  ;;  %1867 = vmatpush.bf16.msrb.mxu1 %v1835_v27 }
 0x257   : > { %v851_v43 = vadd.f32 %v838_v41, %v669_v14  ;;  %v673_v44 = vpop.f32.mrf.mxu2  ;;  %v786_v28 = vpop.f32.mrf.mxu3  ;;  %v1848_v14 = vld [vmem:[#allocation5 + $0x1a8] sm:$0xff]  ;;  %v1846_v41 = vld [vmem:[#allocation5 + $0x198] sm:$0xff] }
 0x258   : > { %1870 = vmatpush.bf16.msrb.mxu2 %v1848_v14 }
 0x259   : > { %v858_v45 = vpack.c.bf16 %v851_v43, %v850_v42  ;;  %v1845_v42 = vld [vmem:[#allocation5 + $0x190] sm:$0xff] }
 0x25a   : > { %1378 = vrot.lane.b32.xlu0 %v782_v25, %s2158_s18  ;;  %1248 = vmatpush.bf16.msrb.mxu0 %v1850_v8 }
 0x25b   : > { %963 = vmatmul.bf16.gmra.mxu0 %v858_v45 }
 0x25c   : > { %v1987_v29 = vpop.eup %1986  ;;  %1871 = vmatpush.bf16.msrb.mxu2 %v1847_v20 }
 0x25d   : > { %v839_v26 = vmul.f32 %v1987_v29, %v2343_v30 }
 0x25e   : > { %1249 = vmatpush.bf16.msrb.mxu0 %v1849_v5 }
 0x25f   : > { %v852_v47 = vadd.f32 %v839_v26, %v672_v34 }
 0x260   : > { %1872 = vmatpush.bf16.msrb.mxu2 %v1846_v41 }
 0x261   : > { %v859_v48 = vpack.c.bf16 %v852_v47, %v852_v47 }
 0x262   : > { %1250 = vmatpush.bf16.msrb.mxu0 %v1848_v14 }
 0x264   : > { %1873 = vmatpush.bf16.msrb.mxu2 %v1845_v42 }
 0x266   : > { %1251 = vmatpush.bf16.msrb.mxu0 %v1847_v20 }
 0x26a   : > { %1252 = vmatpush.bf16.msrb.mxu0 %v1846_v41 }
 0x26b   : > { %968 = vmatmul.bf16.gmra.mxu0 %v859_v48 }
 0x26e   : > { %1253 = vmatpush.bf16.msrb.mxu0 %v1845_v42 }
 0x288   : > { %v939_v11 = vpop.f32.mrf.mxu0 }
 0x289   : > { %v940_v50 = vadd.f32 %v2446_v49, %v939_v11 }
 0x28b   : > { %v986_v52 = vmul.f32 0.01, %v940_v50  ;;  %vm973_vm10 = vcmp.gt.f32.partialorder %v940_v50, 0.0 }
 0x28d   : > { %v999_v54 = vsel %vm973_vm10, %v940_v50, %v986_v52  ;;  %v1844_v52 = vld [vmem:[#allocation5 + $0x188] sm:$0xff] }
 0x28e   : > { %1874 = vmatpush.bf16.msrb.mxu2 %v1844_v52  ;;  %1254 = vmatpush.bf16.msrb.mxu0 %v1844_v52  ;;  %v1305_v52 = vpop.permute.xlu0 %1304 }
 0x290   : > { %v941_v51 = vpop.f32.mrf.mxu0 }
 0x291   : > { %v942_v53 = vadd.f32 %v2446_v49, %v941_v51 }
 0x293   : > { %vm974_vm11 = vcmp.gt.f32.partialorder %v942_v53, 0.0  ;;  %v987_v30 = vmul.f32 0.01, %v942_v53 }
 0x295   : > { %v1000_v55 = vsel %vm974_vm11, %v942_v53, %v987_v30  ;;  %v1843_v53 = vld [vmem:[#allocation5 + $0x180] sm:$0xff] }
 0x296   : > { %v1012_v56 = vpack.c.bf16 %v1000_v55, %v999_v54  ;;  %1255 = vmatpush.bf16.msrb.mxu0 %v1843_v53  ;;  %1875 = vmatpush.bf16.msrb.mxu2 %v1843_v53  ;;  %v2461_v54 = vld [vmem:[#allocation7 + $0x5] ss:$0 sm:$0xff] }
 0x298   : > { %v944_v57 = vpop.f32.mrf.mxu0  ;;  %1097 = vmatmul.bf16.vlgmr.msra.gmra.mxu0 %v1012_v56 }
 0x299   : > { %v945_v58 = vadd.f32 %v2446_v49, %v944_v57 }
 0x29b   : > { %v988_v60 = vmul.f32 0.01, %v945_v58  ;;  %vm975_vm12 = vcmp.gt.f32.partialorder %v945_v58, 0.0 }
 0x29d   : > { %v1001_v63 = vsel %vm975_vm12, %v945_v58, %v988_v60 }
 0x2a0   : > { %v946_v59 = vpop.f32.mrf.mxu0 }
 0x2a1   : > { %v947_v61 = vadd.f32 %v2446_v49, %v946_v59 }
 0x2a3   : > { %vm976_vm13 = vcmp.gt.f32.partialorder %v947_v61, 0.0  ;;  %v989_v62 = vmul.f32 0.01, %v947_v61 }
 0x2a5   : > { %v1002_v9 = vsel %vm976_vm13, %v947_v61, %v989_v62 }
 0x2a6   : > { %v1013_v37 = vpack.c.bf16 %v1002_v9, %v1001_v63 }
 0x2a8   : > { %v949_v16 = vpop.f32.mrf.mxu0  ;;  %1102 = vmatmul.bf16.vlgmr.msrb.gmra.mxu1 %v1013_v37 }
 0x2a9   : > { %v950_v1 = vadd.f32 %v2446_v49, %v949_v16 }
 0x2ab   : > { %v990_v2 = vmul.f32 0.01, %v950_v1  ;;  %vm977_vm14 = vcmp.gt.f32.partialorder %v950_v1, 0.0 }
 0x2ad   : > { %v1003_v6 = vsel %vm977_vm14, %v950_v1, %v990_v2 }
 0x2b0   : > { %v951_v17 = vpop.f32.mrf.mxu0 }
 0x2b1   : > { %v952_v3 = vadd.f32 %v2446_v49, %v951_v17 }
 0x2b3   : > { %v991_v4 = vmul.f32 0.01, %v952_v3  ;;  %vm978_vm15 = vcmp.gt.f32.partialorder %v952_v3, 0.0 }
 0x2b5   : > { %v1004_v7 = vsel %vm978_vm15, %v952_v3, %v991_v4 }
 0x2b6   : > { %v1014_v12 = vpack.c.bf16 %v1004_v7, %v1003_v6 }
 0x2b8   : > { %v954_v13 = vpop.f32.mrf.mxu0  ;;  %1107 = vmatmul.bf16.gmra.mxu1 %v1014_v12 }
 0x2b9   : > { %v955_v18 = vadd.f32 %v2446_v49, %v954_v13 }
 0x2bb   : > { %v992_v22 = vmul.f32 0.01, %v955_v18  ;;  %vm979_vm0 = vcmp.gt.f32.partialorder %v955_v18, 0.0 }
 0x2bd   : > { %v1005_v25 = vsel %vm979_vm0, %v955_v18, %v992_v22 }
 0x2c0   : > { %v956_v19 = vpop.f32.mrf.mxu0 }
 0x2c1   : > { %v957_v23 = vadd.f32 %v2446_v49, %v956_v19 }
 0x2c3   : > { %v993_v24 = vmul.f32 0.01, %v957_v23  ;;  %vm980_vm1 = vcmp.gt.f32.partialorder %v957_v23, 0.0 }
 0x2c5   : > { %v1006_v15 = vsel %vm980_vm1, %v957_v23, %v993_v24 }
 0x2c6   : > { %v1015_v0 = vpack.c.bf16 %v1006_v15, %v1005_v25 }
 0x2c8   : > { %v959_v31 = vpop.f32.mrf.mxu0  ;;  %1112 = vmatmul.bf16.gmra.mxu1 %v1015_v0 }
 0x2c9   : > { %v960_v21 = vadd.f32 %v2446_v49, %v959_v31 }
 0x2cb   : > { %v994_v33 = vmul.f32 0.01, %v960_v21  ;;  %vm981_vm2 = vcmp.gt.f32.partialorder %v960_v21, 0.0 }
 0x2cd   : > { %v1007_v36 = vsel %vm981_vm2, %v960_v21, %v994_v33 }
 0x2d0   : > { %v961_v32 = vpop.f32.mrf.mxu0 }
 0x2d1   : > { %v962_v34 = vadd.f32 %v2446_v49, %v961_v32 }
 0x2d3   : > { %v995_v35 = vmul.f32 0.01, %v962_v34  ;;  %vm982_vm3 = vcmp.gt.f32.partialorder %v962_v34, 0.0 }
 0x2d5   : > { %v1008_v38 = vsel %vm982_vm3, %v962_v34, %v995_v35 }
 0x2d6   : > { %v1016_v39 = vpack.c.bf16 %v1008_v38, %v1007_v36 }
 0x2d8   : > { %v964_v40 = vpop.f32.mrf.mxu0  ;;  %1117 = vmatmul.bf16.gmra.mxu1 %v1016_v39 }
 0x2d9   : > { %v965_v43 = vadd.f32 %v2446_v49, %v964_v40 }
 0x2db   : > { %v996_v28 = vmul.f32 0.01, %v965_v43  ;;  %vm983_vm4 = vcmp.gt.f32.partialorder %v965_v43, 0.0 }
 0x2dd   : > { %v1009_v46 = vsel %vm983_vm4, %v965_v43, %v996_v28  ;;  %vm1395_vm4 = vcmask 523264  }
 0x2e0   : > { %v966_v44 = vpop.f32.mrf.mxu0 }
 0x2e1   : > { %v967_v45 = vadd.f32 %v2446_v49, %v966_v44 }
 0x2e3   : > { %v997_v29 = vmul.f32 0.01, %v967_v45  ;;  %vm984_vm5 = vcmp.gt.f32.partialorder %v967_v45, 0.0 }
 0x2e5   : > { %v1010_v26 = vsel %vm984_vm5, %v967_v45, %v997_v29  ;;  %vm1409_vm5 = vcmask 605184  }
 0x2e6   : > { %v1017_v47 = vpack.c.bf16 %v1010_v26, %v1009_v46 }
 0x2e8   : > { %v969_v48 = vpop.f32.mrf.mxu0  ;;  %1122 = vmatmul.bf16.gmra.mxu1 %v1017_v47 }
 0x2e9   : > { %v970_v10 = vadd.f32 %v2446_v49, %v969_v48 }
 0x2eb   : > { %v998_v27 = vmul.f32 0.01, %v970_v10  ;;  %vm985_vm6 = vcmp.gt.f32.partialorder %v970_v10, 0.0 }
 0x2ed   : > { %v1011_v50 = vsel %vm985_vm6, %v970_v10, %v998_v27  ;;  %vm1423_vm6 = vcmask 687104  }
 0x2ee   : > { %v1018_v51 = vpack.c.bf16 %v1011_v50, %v1011_v50 }
 0x2f0   : > { %v971_v11 = vpop.f32.mrf.mxu0 }
 0x2f8   : > { %1127 = vmatmul.bf16.gmra.mxu1 %v1018_v51  ;;  %v2476_v51 = vld [vmem:[#allocation7 + $0x6] ss:$0 sm:$0xff] }
 0x315   : > { %v1098_v30 = vpop.f32.mrf.mxu0 }
 0x316   : > { %v1099_v55 = vadd.f32 %v2461_v54, %v1098_v30 }
 0x318   : > { %v1145_v57 = vmul.f32 0.01, %v1099_v55  ;;  %vm1132_vm7 = vcmp.gt.f32.partialorder %v1099_v55, 0.0 }
 0x31a   : > { %v1158_v59 = vsel %vm1132_vm7, %v1099_v55, %v1145_v57  ;;  %v1357_v55 = vpop.permute.xlu1 %1356 }
 0x31d   : > { %v1100_v56 = vpop.f32.mrf.mxu0 }
 0x31e   : > { %v1101_v49 = vadd.f32 %v2461_v54, %v1100_v56 }
 0x320   : > { %vm1133_vm8 = vcmp.gt.f32.partialorder %v1101_v49, 0.0  ;;  %v1146_v58 = vmul.f32 0.01, %v1101_v49 }
 0x322   : > { %v1159_v60 = vsel %vm1133_vm8, %v1101_v49, %v1146_v58 }
 0x323   : > { %v1171_v61 = vpack.c.bf16 %v1159_v60, %v1158_v59  ;;  %v1307_v59 = vpop.permute.xlu0 %1306  ;;  %v1359_v60 = vpop.permute.xlu2 %1358 }
 0x325   : > { %v1103_v62 = vpop.f32.mrf.mxu1  ;;  %1256 = vmatmul.bf16.vlgmr.msrb.gmra.mxu0 %v1171_v61 }
 0x326   : > { %v1104_v8 = vadd.f32 %v2461_v54, %v1103_v62 }
 0x328   : > { %v1147_v9 = vmul.f32 0.01, %v1104_v8  ;;  %vm1134_vm9 = vcmp.gt.f32.partialorder %v1104_v8, 0.0 }
 0x32a   : > { %v1160_v1 = vsel %vm1134_vm9, %v1104_v8, %v1147_v9  ;;  %v1309_v8 = vpop.permute.xlu1 %1308 }
 0x32d   : > { %v1105_v63 = vpop.f32.mrf.mxu1 }
 0x32e   : > { %v1106_v37 = vadd.f32 %v2461_v54, %v1105_v63 }
 0x330   : > { %vm1135_vm10 = vcmp.gt.f32.partialorder %v1106_v37, 0.0  ;;  %v1148_v16 = vmul.f32 0.01, %v1106_v37 }
 0x332   : > { %v1161_v17 = vsel %vm1135_vm10, %v1106_v37, %v1148_v16  ;;  %v1311_v37 = vpop.permute.xlu1 %1310 }
 0x333   : > { %v1172_v2 = vpack.c.bf16 %v1161_v17, %v1160_v1  ;;  %v1361_v1 = vpop.permute.xlu0 %1360 }
 0x335   : > { %v1108_v3 = vpop.f32.mrf.mxu1  ;;  %1261 = vmatmul.bf16.vlgmr.msrb.gmra.mxu2 %v1172_v2 }
 0x336   : > { %v1109_v4 = vadd.f32 %v2461_v54, %v1108_v3 }
 0x338   : > { %v1149_v6 = vmul.f32 0.01, %v1109_v4  ;;  %vm1136_vm11 = vcmp.gt.f32.partialorder %v1109_v4, 0.0 }
 0x33a   : > { %v1162_v13 = vsel %vm1136_vm11, %v1109_v4, %v1149_v6  ;;  %v1313_v4 = vpop.permute.xlu2 %1312 }
 0x33d   : > { %v1110_v5 = vpop.f32.mrf.mxu1 }
 0x33e   : > { %v1111_v7 = vadd.f32 %v2461_v54, %v1110_v5 }
 0x340   : > { %v1150_v12 = vmul.f32 0.01, %v1111_v7  ;;  %vm1137_vm12 = vcmp.gt.f32.partialorder %v1111_v7, 0.0 }
 0x342   : > { %v1163_v18 = vsel %vm1137_vm12, %v1111_v7, %v1150_v12  ;;  %v1363_v7 = vpop.permute.xlu1 %1362 }
 0x343   : > { %v1173_v19 = vpack.c.bf16 %v1163_v18, %v1162_v13 }
 0x345   : > { %v1113_v22 = vpop.f32.mrf.mxu1  ;;  %1266 = vmatmul.bf16.gmra.mxu2 %v1173_v19  ;;  %v1365_v19 = vpop.permute.xlu2 %1364 }
 0x346   : > { %v1114_v23 = vadd.f32 %v2461_v54, %v1113_v22 }
 0x348   : > { %v1151_v14 = vmul.f32 0.01, %v1114_v23  ;;  %vm1138_vm13 = vcmp.gt.f32.partialorder %v1114_v23, 0.0 }
 0x34a   : > { %v1164_v0 = vsel %vm1138_vm13, %v1114_v23, %v1151_v14 }
 0x34d   : > { %v1115_v24 = vpop.f32.mrf.mxu1 }
 0x34e   : > { %v1116_v25 = vadd.f32 %v2461_v54, %v1115_v24 }
 0x350   : > { %v1152_v15 = vmul.f32 0.01, %v1116_v25  ;;  %vm1139_vm14 = vcmp.gt.f32.partialorder %v1116_v25, 0.0 }
 0x352   : > { %v1165_v31 = vsel %vm1139_vm14, %v1116_v25, %v1152_v15  ;;  %v1367_v15 = vpop.permute.xlu0 %1366 }
 0x353   : > { %v1174_v20 = vpack.c.bf16 %v1165_v31, %v1164_v0 }
 0x355   : > { %v1118_v21 = vpop.f32.mrf.mxu1  ;;  %1271 = vmatmul.bf16.gmra.mxu2 %v1174_v20  ;;  %v1315_v20 = vpop.permute.xlu2 %1314 }
 0x356   : > { %v1119_v32 = vadd.f32 %v2461_v54, %v1118_v21 }
 0x358   : > { %v1153_v34 = vmul.f32 0.01, %v1119_v32  ;;  %vm1140_vm15 = vcmp.gt.f32.partialorder %v1119_v32, 0.0 }
 0x35a   : > { %v1166_v38 = vsel %vm1140_vm15, %v1119_v32, %v1153_v34  ;;  %v1369_v34 = vpop.permute.xlu1 %1368 }
 0x35d   : > { %v1120_v33 = vpop.f32.mrf.mxu1 }
 0x35e   : > { %v1121_v35 = vadd.f32 %v2461_v54, %v1120_v33 }
 0x360   : > { %v1154_v36 = vmul.f32 0.01, %v1121_v35  ;;  %vm1141_vm0 = vcmp.gt.f32.partialorder %v1121_v35, 0.0 }
 0x362   : > { %v1167_v39 = vsel %vm1141_vm0, %v1121_v35, %v1154_v36 }
 0x363   : > { %v1175_v40 = vpack.c.bf16 %v1167_v39, %v1166_v38  ;;  %v1317_v38 = vpop.permute.xlu0 %1316 }
 0x365   : > { %v1123_v41 = vpop.f32.mrf.mxu1  ;;  %1276 = vmatmul.bf16.gmra.mxu2 %v1175_v40 }
 0x366   : > { %v1124_v42 = vadd.f32 %v2461_v54, %v1123_v41 }
 0x368   : > { %v1155_v44 = vmul.f32 0.01, %v1124_v42  ;;  %vm1142_vm1 = vcmp.gt.f32.partialorder %v1124_v42, 0.0 }
 0x36a   : > { %v1168_v29 = vsel %vm1142_vm1, %v1124_v42, %v1155_v44  ;;  %v1371_v42 = vpop.permute.xlu2 %1370 }
 0x36d   : > { %v1125_v43 = vpop.f32.mrf.mxu1 }
 0x36e   : > { %v1126_v28 = vadd.f32 %v2461_v54, %v1125_v43 }
 0x370   : > { %v1156_v45 = vmul.f32 0.01, %v1126_v28  ;;  %vm1143_vm2 = vcmp.gt.f32.partialorder %v1126_v28, 0.0 }
 0x372   : > { %v1169_v46 = vsel %vm1143_vm2, %v1126_v28, %v1156_v45  ;;  %v1319_v28 = vpop.permute.xlu1 %1318 }
 0x373   : > { %v1176_v26 = vpack.c.bf16 %v1169_v46, %v1168_v29 }
 0x375   : > { %v1128_v47 = vpop.f32.mrf.mxu1  ;;  %1281 = vmatmul.bf16.gmra.mxu2 %v1176_v26  ;;  %v1373_v26 = vpop.permute.xlu0 %1372 }
 0x376   : > { %v1129_v48 = vadd.f32 %v2461_v54, %v1128_v47 }
 0x378   : > { %v1157_v10 = vmul.f32 0.01, %v1129_v48  ;;  %vm1144_vm3 = vcmp.gt.f32.partialorder %v1129_v48, 0.0 }
 0x37a   : > { %v1170_v11 = vsel %vm1144_vm3, %v1129_v48, %v1157_v10  ;;  %v1321_v48 = vpop.permute.xlu2 %1320 }
 0x37b   : > { %v1177_v50 = vpack.c.bf16 %v1170_v11, %v1170_v11 }
 0x37d   : > { %v1130_v27 = vpop.f32.mrf.mxu1 }
 0x385   : > { %1286 = vmatmul.bf16.gmra.mxu2 %v1177_v50 }
 0x3a2   : > { %v1257_v53 = vpop.f32.mrf.mxu0 }
 0x3a3   : > { %v1258_v30 = vadd.f32 %v2476_v51, %v1257_v53 }
 0x3a5   : > { %v1396_v56 = vsel %vm1395_vm4, %v1258_v30, %v1305_v52  ;;  %v1375_v52 = vpop.permute.xlu1 %1374  ;;  %v1327_v30 = vpop.permute.xlu2 %1326 }
 0x3a6   : > { %v1410_v54 = vsel %vm1409_vm5, %v1396_v56, %v1357_v55  ;;  %v1323_v55 = vpop.permute.xlu0 %1322 }
 0x3a7   : > { %v1424_v57 = vsel %vm1423_vm6, %v1410_v54, 0.0 }
 0x3a8   : > { %1437 = vst [vmem:[%s2484_s24] sm:$0xff] %v1424_v57 }
 0x3aa   : > { %v1259_v49 = vpop.f32.mrf.mxu0 }
 0x3ab   : > { %v1260_v58 = vadd.f32 %v2476_v51, %v1259_v49 }
 0x3ad   : > { %v1397_v61 = vsel %vm1395_vm4, %v1260_v58, %v1307_v59 }
 0x3ae   : > { %v1411_v62 = vsel %vm1409_vm5, %v1397_v61, %v1359_v60  ;;  %v1329_v59 = vpop.permute.xlu0 %1328  ;;  %v1325_v61 = vpop.permute.xlu1 %1324 }
 0x3af   : > { %v1425_v63 = vsel %vm1423_vm6, %v1411_v62, 0.0  ;;  %v1377_v62 = vpop.permute.xlu2 %1376 }
 0x3b0   : > { %1438 = vst [vmem:[%s2484_s24 + $0x8] sm:$0xff] %v1425_v63 }
 0x3b8   : > { %v1262_v9 = vpop.f32.mrf.mxu2 }
 0x3b9   : > { %v1263_v16 = vadd.f32 %v2476_v51, %v1262_v9 }
 0x3bb   : > { %v1398_v17 = vsel %vm1395_vm4, %v1263_v16, %v1309_v8 }
 0x3bc   : > { %v1412_v2 = vsel %vm1409_vm5, %v1398_v17, %v1361_v1  ;;  %v1379_v1 = vpop.permute.xlu0 %1378 }
 0x3bd   : > { %v1426_v3 = vsel %vm1423_vm6, %v1412_v2, 0.0 }
 0x3be   : > { %1439 = vst [vmem:[%s2484_s24 + $0x10] sm:$0xff] %v1426_v3 }
 0x3c0   : > { %v1264_v5 = vpop.f32.mrf.mxu2 }
 0x3c1   : > { %v1265_v6 = vadd.f32 %v2476_v51, %v1264_v5 }
 0x3c3   : > { %v1399_v12 = vsel %vm1395_vm4, %v1265_v6, %v1311_v37  ;;  %v1381_v6 = vpop.permute.xlu1 %1380 }
 0x3c4   : > { %v1413_v13 = vsel %vm1409_vm5, %v1399_v12, %v1363_v7 }
 0x3c5   : > { %v1427_v18 = vsel %vm1423_vm6, %v1413_v13, 0.0 }
 0x3c6   : > { %1440 = vst [vmem:[%s2484_s24 + $0x18] sm:$0xff] %v1427_v18 }
 0x3c8   : > { %v1267_v22 = vpop.f32.mrf.mxu2 }
 0x3c9   : > { %v1268_v23 = vadd.f32 %v2476_v51, %v1267_v22 }
 0x3cb   : > { %v1400_v24 = vsel %vm1395_vm4, %v1268_v23, %v1313_v4 }
 0x3cc   : > { %v1414_v14 = vsel %vm1409_vm5, %v1400_v24, %v1365_v19 }
 0x3cd   : > { %v1428_v25 = vsel %vm1423_vm6, %v1414_v14, 0.0 }
 0x3ce   : > { %1441 = vst [vmem:[%s2484_s24 + $0x20] sm:$0xff] %v1428_v25 }
 0x3d0   : > { %v1269_v0 = vpop.f32.mrf.mxu2 }
 0x3d1   : > { %v1270_v31 = vadd.f32 %v2476_v51, %v1269_v0 }
 0x3d3   : > { %v1401_v21 = vsel %vm1395_vm4, %v1270_v31, %v1315_v20 }
 0x3d4   : > { %v1415_v32 = vsel %vm1409_vm5, %v1401_v21, %v1367_v15 }
 0x3d5   : > { %v1429_v33 = vsel %vm1423_vm6, %v1415_v32, 0.0 }
 0x3d6   : > { %1442 = vst [vmem:[%s2484_s24 + $0x28] sm:$0xff] %v1429_v33 }
 0x3d8   : > { %v1272_v35 = vpop.f32.mrf.mxu2 }
 0x3d9   : > { %v1273_v36 = vadd.f32 %v2476_v51, %v1272_v35 }
 0x3db   : > { %v1402_v39 = vsel %vm1395_vm4, %v1273_v36, %v1317_v38 }
 0x3dc   : > { %v1416_v40 = vsel %vm1409_vm5, %v1402_v39, %v1369_v34 }
 0x3dd   : > { %v1430_v41 = vsel %vm1423_vm6, %v1416_v40, 0.0 }
 0x3de   : > { %1443 = vst [vmem:[%s2484_s24 + $0x30] sm:$0xff] %v1430_v41 }
 0x3e0   : > { %v1274_v43 = vpop.f32.mrf.mxu2 }
 0x3e1   : > { %v1275_v44 = vadd.f32 %v2476_v51, %v1274_v43 }
 0x3e3   : > { %v1403_v45 = vsel %vm1395_vm4, %v1275_v44, %v1319_v28 }
 0x3e4   : > { %v1417_v29 = vsel %vm1409_vm5, %v1403_v45, %v1371_v42 }
 0x3e5   : > { %v1431_v46 = vsel %vm1423_vm6, %v1417_v29, 0.0 }
 0x3e6   : > { %1444 = vst [vmem:[%s2484_s24 + $0x38] sm:$0xff] %v1431_v46 }
 0x3e8   : > { %v1277_v47 = vpop.f32.mrf.mxu2 }
 0x3e9   : > { %v1278_v10 = vadd.f32 %v2476_v51, %v1277_v47 }
 0x3eb   : > { %v1404_v27 = vsel %vm1395_vm4, %v1278_v10, %v1321_v48 }
 0x3ec   : > { %v1418_v11 = vsel %vm1409_vm5, %v1404_v27, %v1373_v26 }
 0x3ed   : > { %v1432_v50 = vsel %vm1423_vm6, %v1418_v11, 0.0 }
 0x3ee   : > { %1445 = vst [vmem:[%s2484_s24 + $0x40] sm:$0xff] %v1432_v50 }
 0x3f0   : > { %v1279_v53 = vpop.f32.mrf.mxu2 }
 0x3f1   : > { %v1280_v56 = vadd.f32 %v2476_v51, %v1279_v53 }
 0x3f3   : > { %v1405_v54 = vsel %vm1395_vm4, %v1280_v56, %v1323_v55 }
 0x3f4   : > { %v1419_v57 = vsel %vm1409_vm5, %v1405_v54, %v1375_v52 }
 0x3f5   : > { %v1433_v49 = vsel %vm1423_vm6, %v1419_v57, 0.0 }
 0x3f6   : > { %1446 = vst [vmem:[%s2484_s24 + $0x48] sm:$0xff] %v1433_v49 }
 0x3f8   : > { %v1282_v58 = vpop.f32.mrf.mxu2 }
 0x3f9   : > { %v1283_v60 = vadd.f32 %v2476_v51, %v1282_v58 }
 0x3fb   : > { %v1406_v8 = vsel %vm1395_vm4, %v1283_v60, %v1325_v61 }
 0x3fc   : > { %v1420_v63 = vsel %vm1409_vm5, %v1406_v8, %v1377_v62 }
 0x3fd   : > { %v1434_v9 = vsel %vm1423_vm6, %v1420_v63, 0.0 }
 0x3fe   : > { %1447 = vst [vmem:[%s2484_s24 + $0x50] sm:$0xff] %v1434_v9 }
 0x400   : > { %v1284_v37 = vpop.f32.mrf.mxu2 }
 0x401   : > { %v1285_v16 = vadd.f32 %v2476_v51, %v1284_v37 }
 0x403   : > { %v1407_v17 = vsel %vm1395_vm4, %v1285_v16, %v1327_v30 }
 0x404   : > { %v1421_v2 = vsel %vm1409_vm5, %v1407_v17, %v1379_v1 }
 0x405   : > { %v1435_v3 = vsel %vm1423_vm6, %v1421_v2, 0.0 }
 0x406   : > { %1448 = vst [vmem:[%s2484_s24 + $0x58] sm:$0xff] %v1435_v3 }
 0x408   : > { %v1287_v4 = vpop.f32.mrf.mxu2 }
 0x409   : > { %v1288_v5 = vadd.f32 %v2476_v51, %v1287_v4 }
 0x40b   : > { %v1408_v7 = vsel %vm1395_vm4, %v1288_v5, %v1329_v59 }
 0x40c   : > { %v1422_v12 = vsel %vm1409_vm5, %v1408_v7, %v1381_v6 }
 0x40d   : > { %v1436_v13 = vsel %vm1423_vm6, %v1422_v12, 0.0 }
 0x40e   : > { %1449 = vst [vmem:[%s2484_s24 + $0x60] sm:$0xff] %v1436_v13 }
 0x40f   : > { %2105 = shalt.err (!%p2102_p10)
}
 0x410   : > { %s2160_s26 = smov 128   ;;  %s2161_s5 = smov 8   ;;  %v1289_v51 = vpop.f32.mrf.mxu2 }
 0x411   : > { %1888 = dma.vmem_to_hbm [thread:$0]  (%p2251_p5), %s1464_s7, 1664, %s1466_s9, %s1451_s16, %s2160_s26, %s2160_s26, %s2161_s5  }
 0x412 PF: > { %s1480_s18 = sand.u32 1, %s2136_s12   ;;  %p2590_p12 = scmp.ge.s32.totalorder %s2148_s15, 2 }
 0x413   : > { %s1481_s23 = scalar_lea.sflag [#allocation4], %s1480_s18 }
 0x414   : > { %p1902_p13 = pnand %p2590_p12, %p2217_p6 }
 0x416   : > { %p1903_p0 = pneg %p1902_p13 }
 0x418   : > { %2131 = dma.done.wait (%p1903_p0), %s1481_s23, 1664  }
 0x419   : > { %2133 = vsyncadd (%p1903_p0), %s1481_s23, 4294965632  ;;  %p17_p3 = scmp.ge.s32.totalorder %s2238_s8, 4   ;;  %s2591_s12 = smov %s2140_s13 }
 0x41a   : > { %s2592_s13 = smov %s2144_s14  ;;  %s2593_s14 = smov %s2247_s11 }
 0x41b   : > { %s2594_s15 = smov %s2238_s8  ;;  %19 = sbr.rel (!%p17_p3) target bundleno = 6 (0x6), region = 97 }
 0x420   :  { %1487 = vsyncpa [#allocation3], 1 }
 0x421   :  { %1489 = vsyncpa [#allocation3 + $0x1], 1 }
 0x422   :  { %1490 = vsyncpa [#allocation6], 1 }
 0x423   :  { %1491 = vsyncpa [#allocation4], 1 }
 0x424   :  { %1493 = vsyncpa [#allocation4 + $0x1], 1 }

</bundles_post_ra>
